<compile_context>
chip_gen: v6e
topology: v6e:2x2x1
jax: 0.10.0
libtpu: 0.0.40
codegen_flags: <defaults>
</compile_context>

<pallas_src>
import functools

import jax
import jax.numpy as jnp
from jax.experimental import pallas as pl
from jax.experimental.pallas import tpu as pltpu

ACTIVATION = jnp.tanh          # args.activation_critic == "tanh"
LN_EPS = 1e-5


def _ln_act(y, gamma, beta):
    """LayerNorm over the feature (sublane) axis of a (features, batch) tile, then tanh.

    Two-pass statistics (matches the reference; immune to cancellation).  gamma/beta are
    (features, 1) columns that broadcast along the lane (batch) axis.  All f32.
    """
    mu = jnp.mean(y, axis=0, keepdims=True)            # (1, tile)
    d = y - mu
    var = jnp.mean(d * d, axis=0, keepdims=True)       # (1, tile)
    yn = d * jax.lax.rsqrt(var + LN_EPS)
    return ACTIVATION(yn * gamma + beta)


def _critic_kernel(num_extra_blocks, *refs):
    """refs = s_ref (S, tile), a_ref (A, tile),
              W_s^T, W_a^T, b1, g1, be1,                (first block, concat fused)
              [W^T, b, g, be] * num_extra_blocks,       (remaining hidden blocks)
              w_out_col (h2, 1), b_out (1, 1),          (final projection)
              out_ref (1, tile)
    Everything is computed transposed: activations are (hidden, batch_tile).
    """
    s_ref, a_ref = refs[0], refs[1]
    out_ref = refs[-1]
    p = refs[2:-1]

    # ---- First hidden block: concat fused as split-weight matmul sum ----
    w_s, w_a, b1, g1, be1 = p[0:5]
    mm_dtype = w_s.dtype                                # bf16 (default) or f32
    y = (jnp.dot(w_s[...], s_ref[...].astype(mm_dtype),
                 preferred_element_type=jnp.float32)
         + jnp.dot(w_a[...], a_ref[...].astype(mm_dtype),
                   preferred_element_type=jnp.float32)
         + b1[...])
    h = _ln_act(y, g1[...], be1[...])                   # (h1, tile) f32

    # ---- Remaining hidden blocks ----
    for blk in range(num_extra_blocks):
        w, b, g, be = p[5 + 4 * blk: 9 + 4 * blk]
        y = jnp.dot(w[...], h.astype(w.dtype),
                    preferred_element_type=jnp.float32) + b[...]
        h = _ln_act(y, g[...], be[...])

    # ---- Output head: (h2 -> 1) as broadcast multiply + sublane reduce ----
    wo = p[5 + 4 * num_extra_blocks]                    # (h2, 1) f32
    bo = p[6 + 4 * num_extra_blocks]                    # (1, 1)  f32
    q = jnp.sum(h * wo[...], axis=0, keepdims=True) + bo[...]   # (1, tile)
    out_ref[...] = q.astype(out_ref.dtype)              # lane-dense store


def _round_up(x, m):
    return -(-x // m) * m


def _tpu_generation_info():
    """(physical VMEM bytes, #TensorCores sharing the grid) with safe fallbacks."""
    vmem_bytes = 64 * 1024 * 1024                       # conservative (v7x-sized) default
    try:
        info = pltpu.get_tpu_info()
        vmem_bytes = int(getattr(info, "vmem_capacity_bytes", vmem_bytes))
    except Exception:
        pass
    num_tc = 2                                          # conservative: keep the 2-step split
    try:
        kind = jax.devices()[0].device_kind.lower()
        # v5e / v6e have a single TensorCore per chip -> no forced grid split.
        if any(t in kind for t in ("v5e", "v5 lite", "v5lite", "v6e", "v6 lite", "v6lite")):
            num_tc = 1
    except Exception:
        pass
    return vmem_bytes, num_tc


def _pick_batch_tile(B, in_dim, h_max, param_bytes, num_tc, vmem_bytes):
    """Largest safe batch tile (multiple of 128; batch lives on the lane axis)."""
    if vmem_bytes <= 72 * 1024 * 1024:                  # v7x-class (64 MiB physical VMEM)
        act_budget, max_tile = 16 * 1024 * 1024, 2048
    else:                                               # v5e / v6e / v5p (128 MiB VMEM)
        act_budget, max_tile = 56 * 1024 * 1024, 4096
    # Full-shape parameter blocks may be double-buffered -> charge them honestly.
    act_budget = max(act_budget - 2 * param_bytes, 2 * 1024 * 1024)
    per_col = (2 * in_dim * 4          # double-buffered state/action columns (f32)
               + 5 * h_max * 4         # live (hidden, tile) f32 activation copies
               + 2 * 4)                # double-buffered output row
    tile = min(max_tile, act_budget // per_col)
    tile = min(tile, _round_up(B, 128))                 # never pad more than one tile
    if num_tc >= 2 and B > 128:
        # >= 2 grid steps so both TensorCores get work (dimension_semantics="parallel").
        tile = min(tile, _round_up(-(-B // 2), 128))
    tile = max(128, (tile // 128) * 128)
    return tile


def _prep_params(params, state_dim, matmul_dtype):
    """Flatten params in kernel-arg order, transposed for the batch-on-lanes layout."""
    W1, b1, g1, be1 = params[0]
    W1_T = jnp.transpose(W1).astype(matmul_dtype)       # (h1, S+A)
    flat = [W1_T[:, :state_dim],                        # W_s^T (h1, S)
            W1_T[:, state_dim:],                        # W_a^T (h1, A)
            jnp.reshape(b1, (-1, 1)).astype(jnp.float32),
            jnp.reshape(g1, (-1, 1)).astype(jnp.float32),
            jnp.reshape(be1, (-1, 1)).astype(jnp.float32)]
    for (W, b, g, be) in params[1:-1]:
        flat.append(jnp.transpose(W).astype(matmul_dtype))
        flat.append(jnp.reshape(b, (-1, 1)).astype(jnp.float32))
        flat.append(jnp.reshape(g, (-1, 1)).astype(jnp.float32))
        flat.append(jnp.reshape(be, (-1, 1)).astype(jnp.float32))
    W_out, b_out = params[-1]
    flat.append(jnp.reshape(W_out, (-1, 1)).astype(jnp.float32))   # (h2, 1) column, f32 head
    flat.append(jnp.reshape(b_out, (1, 1)).astype(jnp.float32))
    return flat


def critic_forward(state, action, params, *, batch_tile=None, matmul_dtype=jnp.bfloat16):
    """params: list of (W, b, gamma, beta) per hidden block + (W_out, b_out).
    W is (in_features, out_features); semantics match x @ W + b of the PyTorch module."""
    B, S = state.shape
    _, A = action.shape
    num_hidden_blocks = len(params) - 1
    num_extra_blocks = num_hidden_blocks - 1
    h_max = max(blk[0].shape[1] for blk in params[:-1])

    flat_params = _prep_params(params, S, matmul_dtype)
    param_bytes = sum(int(p.size) * p.dtype.itemsize for p in flat_params)

    vmem_bytes, num_tc = _tpu_generation_info()
    if batch_tile is None:
        batch_tile = _pick_batch_tile(B, S + A, h_max, param_bytes, num_tc, vmem_bytes)
    batch_tile = max(128, _round_up(batch_tile, 128))

    # Pad ragged batches; padded columns are independent (per-column LN) and sliced off.
    B_pad = _round_up(B, batch_tile)
    if B_pad != B:
        pad = B_pad - B
        state = jnp.pad(state, ((0, pad), (0, 0)))
        action = jnp.pad(action, ((0, pad), (0, 0)))

    # Batch goes on the lane axis.
    state_t = jnp.transpose(state)                      # (S, B_pad)
    action_t = jnp.transpose(action)                    # (A, B_pad)

    kernel = functools.partial(_critic_kernel, num_extra_blocks)
    grid = (B_pad // batch_tile,)
    vmem_limit = int(min(96 * 1024 * 1024,
                         max(32 * 1024 * 1024, (vmem_bytes * 3) // 4)))

    def _call(single_buffer_params):
        in_specs = [pl.BlockSpec((S, batch_tile), lambda i: (0, i)),
                    pl.BlockSpec((A, batch_tile), lambda i: (0, i))]
        for prm in flat_params:
            kwargs = {}
            if single_buffer_params:
                # Grid-invariant blocks: one buffer is enough (saves VMEM).
                kwargs["pipeline_mode"] = pl.Buffered(1)
            in_specs.append(
                pl.BlockSpec(prm.shape, lambda i, r=prm.ndim: (0,) * r, **kwargs))
        return pl.pallas_call(
            kernel,
            out_shape=jax.ShapeDtypeStruct((1, B_pad), jnp.float32),
            grid_spec=pltpu.PrefetchScalarGridSpec(
                num_scalar_prefetch=0,
                grid=grid,
                in_specs=in_specs,
                out_specs=pl.BlockSpec((1, batch_tile), lambda i: (0, i)),
            ),
            compiler_params=pltpu.CompilerParams(
                dimension_semantics=("parallel",),
                vmem_limit_bytes=vmem_limit,
            ),
        )(state_t, action_t, *flat_params)

    try:
        out = _call(True)
    except Exception:
        # Fallback if this JAX build rejects pipeline_mode=pl.Buffered(1).
        out = _call(False)
    return jnp.transpose(out[:, :B])                    # (B, 1)


def make_critic_params(key, state_dim, action_dim, h1, h2, num_layers):
    """Deterministic synthetic parameters matching the PyTorch module's shapes."""
    fan_pairs = [(state_dim + action_dim, h1)]
    prev = h1
    for _ in range(num_layers):
        fan_pairs.append((prev, h2))
        prev = h2
    params = []
    for (fin, fout) in fan_pairs:
        key, k1, k2 = jax.random.split(key, 3)
        bound = 1.0 / jnp.sqrt(fin)
        W = jax.random.uniform(k1, (fin, fout), jnp.float32, -bound, bound)
        b = jax.random.uniform(k2, (1, fout), jnp.float32, -bound, bound)
        gamma = jnp.ones((1, fout), jnp.float32)   # LayerNorm weight
        beta = jnp.zeros((1, fout), jnp.float32)   # LayerNorm bias
        params.append((W, b, gamma, beta))
    key, k1, k2 = jax.random.split(key, 3)
    bound = 1.0 / jnp.sqrt(prev)
    W_out = jax.random.uniform(k1, (prev, 1), jnp.float32, -bound, bound)
    b_out = jax.random.uniform(k2, (1, 1), jnp.float32, -bound, bound)
    params.append((W_out, b_out))
    return params


def critic_reference(state, action, params, matmul_dtype=jnp.float32):
    """Pure-JAX reference.  With matmul_dtype=bf16 it mirrors the kernel's mixed precision
    (bf16 MXU operands, f32 accumulation / LayerNorm / head) for a tight comparison."""
    x = jnp.concatenate([state, action], axis=1)
    for (W, b, g, be) in params[:-1]:
        y = jnp.dot(x.astype(matmul_dtype), W.astype(matmul_dtype),
                    preferred_element_type=jnp.float32) + b
        mu = jnp.mean(y, axis=-1, keepdims=True)
        var = jnp.mean((y - mu) ** 2, axis=-1, keepdims=True)
        y = (y - mu) * jax.lax.rsqrt(var + LN_EPS) * g + be
        x = ACTIVATION(y)
    W_out, b_out = params[-1]
    return jnp.dot(x, W_out, preferred_element_type=jnp.float32) + b_out


if __name__ == "__main__":
    # Shapes implied by the module: state_dim, action_dim, critic_hidden_size=(h1,h2),
    # critic_num_layers=L.  (h1 == h2, matching the module's Linear(h1, h2) stacking.)
    state_dim, action_dim = 8, 4
    h1, h2 = 32, 32
    L = 2
    batch = 16

    key = jax.random.PRNGKey(0)
    key, ks, ka, kp = jax.random.split(key, 4)
    state = jax.random.normal(ks, (batch, state_dim), jnp.float32)
    action = jax.random.normal(ka, (batch, action_dim), jnp.float32)
    params = make_critic_params(kp, state_dim, action_dim, h1, h2, L)

    q_ref_f32 = critic_reference(state, action, params)

    # f32 MXU path: tight check against the pure-f32 reference.
    q32 = jax.block_until_ready(
        critic_forward(state, action, params, matmul_dtype=jnp.float32))
    assert q32.shape == (batch, 1)
    assert jnp.allclose(q32, q_ref_f32, atol=5e-4, rtol=5e-4), "f32 path mismatch"

    # Default bf16-MXU path: check against the precision-matched reference.
    q = jax.block_until_ready(critic_forward(state, action, params))
    assert q.shape == (batch, 1)
    q_ref_bf16 = critic_reference(state, action, params, matmul_dtype=jnp.bfloat16)
    assert jnp.allclose(q, q_ref_bf16, atol=5e-3, rtol=5e-3), "bf16 path mismatch"

    # Ragged batch (exercises the pad + slice path).
    q13 = jax.block_until_ready(
        critic_forward(state[:13], action[:13], params, matmul_dtype=jnp.float32))
    assert q13.shape == (13, 1)
    assert jnp.allclose(q13, critic_reference(state[:13], action[:13], params),
                        atol=5e-4, rtol=5e-4), "ragged batch mismatch"

    print("KERNEL_OK")
</pallas_src>

<mosaic_0001>
module attributes {stable_mosaic.version = 11 : i64} {
  func.func @_critic_kernel(%arg0: i32, %arg1: memref<8x128xf32, #tpu.memory_space<vmem>>, %arg2: memref<4x128xf32, #tpu.memory_space<vmem>>, %arg3: memref<32x8xf32, #tpu.memory_space<vmem>>, %arg4: memref<32x4xf32, #tpu.memory_space<vmem>>, %arg5: memref<32x1xf32, #tpu.memory_space<vmem>>, %arg6: memref<32x1xf32, #tpu.memory_space<vmem>>, %arg7: memref<32x1xf32, #tpu.memory_space<vmem>>, %arg8: memref<32x32xf32, #tpu.memory_space<vmem>>, %arg9: memref<32x1xf32, #tpu.memory_space<vmem>>, %arg10: memref<32x1xf32, #tpu.memory_space<vmem>>, %arg11: memref<32x1xf32, #tpu.memory_space<vmem>>, %arg12: memref<32x32xf32, #tpu.memory_space<vmem>>, %arg13: memref<32x1xf32, #tpu.memory_space<vmem>>, %arg14: memref<32x1xf32, #tpu.memory_space<vmem>>, %arg15: memref<32x1xf32, #tpu.memory_space<vmem>>, %arg16: memref<32x1xf32, #tpu.memory_space<vmem>>, %arg17: memref<1x1xf32, #tpu.memory_space<vmem>>, %arg18: memref<1x128xf32, #tpu.memory_space<vmem>>) attributes {dimension_semantics = [#tpu.dimension_semantics<parallel>], iteration_bounds = array<i64: 1>, scalar_prefetch = 0 : i64, scratch_operands = 0 : i64, tpu.core_type = #tpu.core_type<tc>, window_params = [{transform_indices = @transform_0, window_bounds = array<i64: 8, 128>}, {transform_indices = @transform_1, window_bounds = array<i64: 4, 128>}, {pipeline_mode = #tpu.pipeline_mode<synchronous>, transform_indices = @transform_2, window_bounds = array<i64: 32, 8>}, {pipeline_mode = #tpu.pipeline_mode<synchronous>, transform_indices = @transform_3, window_bounds = array<i64: 32, 4>}, {pipeline_mode = #tpu.pipeline_mode<synchronous>, transform_indices = @transform_4, window_bounds = array<i64: 32, 1>}, {pipeline_mode = #tpu.pipeline_mode<synchronous>, transform_indices = @transform_5, window_bounds = array<i64: 32, 1>}, {pipeline_mode = #tpu.pipeline_mode<synchronous>, transform_indices = @transform_6, window_bounds = array<i64: 32, 1>}, {pipeline_mode = #tpu.pipeline_mode<synchronous>, transform_indices = @transform_7, window_bounds = array<i64: 32, 32>}, {pipeline_mode = #tpu.pipeline_mode<synchronous>, transform_indices = @transform_8, window_bounds = array<i64: 32, 1>}, {pipeline_mode = #tpu.pipeline_mode<synchronous>, transform_indices = @transform_9, window_bounds = array<i64: 32, 1>}, {pipeline_mode = #tpu.pipeline_mode<synchronous>, transform_indices = @transform_10, window_bounds = array<i64: 32, 1>}, {pipeline_mode = #tpu.pipeline_mode<synchronous>, transform_indices = @transform_11, window_bounds = array<i64: 32, 32>}, {pipeline_mode = #tpu.pipeline_mode<synchronous>, transform_indices = @transform_12, window_bounds = array<i64: 32, 1>}, {pipeline_mode = #tpu.pipeline_mode<synchronous>, transform_indices = @transform_13, window_bounds = array<i64: 32, 1>}, {pipeline_mode = #tpu.pipeline_mode<synchronous>, transform_indices = @transform_14, window_bounds = array<i64: 32, 1>}, {pipeline_mode = #tpu.pipeline_mode<synchronous>, transform_indices = @transform_15, window_bounds = array<i64: 32, 1>}, {pipeline_mode = #tpu.pipeline_mode<synchronous>, transform_indices = @transform_16, window_bounds = array<i64: 1, 1>}, {transform_indices = @transform_17, window_bounds = array<i64: 1, 128>}]} {
    %c0 = arith.constant 0 : index
    %c0_0 = arith.constant 0 : index
    %0 = vector.load %arg3[%c0, %c0_0] : memref<32x8xf32, #tpu.memory_space<vmem>>, vector<32x8xf32>
    %c0_1 = arith.constant 0 : index
    %c0_2 = arith.constant 0 : index
    %1 = vector.load %arg1[%c0_1, %c0_2] : memref<8x128xf32, #tpu.memory_space<vmem>>, vector<8x128xf32>
    %cst = arith.constant dense<0.000000e+00> : vector<32x128xf32>
    %2 = tpu.matmul %0, %1, %cst {dimension_numbers = #tpu.dot_dimension_numbers<[1], [0], [0], [1], [0, 0, 1, 1], [], []>} : vector<32x8xf32>, vector<8x128xf32>, vector<32x128xf32> -> vector<32x128xf32>
    %c0_3 = arith.constant 0 : index
    %c0_4 = arith.constant 0 : index
    %3 = vector.load %arg4[%c0_3, %c0_4] : memref<32x4xf32, #tpu.memory_space<vmem>>, vector<32x4xf32>
    %c0_5 = arith.constant 0 : index
    %c0_6 = arith.constant 0 : index
    %4 = vector.load %arg2[%c0_5, %c0_6] : memref<4x128xf32, #tpu.memory_space<vmem>>, vector<4x128xf32>
    %cst_7 = arith.constant dense<0.000000e+00> : vector<32x128xf32>
    %5 = tpu.matmul %3, %4, %cst_7 {dimension_numbers = #tpu.dot_dimension_numbers<[1], [0], [0], [1], [0, 0, 1, 1], [], []>} : vector<32x4xf32>, vector<4x128xf32>, vector<32x128xf32> -> vector<32x128xf32>
    %6 = arith.addf %2, %5 : vector<32x128xf32>
    %c0_8 = arith.constant 0 : index
    %c0_9 = arith.constant 0 : index
    %7 = vector.load %arg5[%c0_8, %c0_9] : memref<32x1xf32, #tpu.memory_space<vmem>>, vector<32x1xf32>
    %8 = vector.broadcast %7 : vector<32x1xf32> to vector<32x128xf32>
    %9 = arith.addf %6, %8 : vector<32x128xf32>
    %c0_10 = arith.constant 0 : index
    %c0_11 = arith.constant 0 : index
    %10 = vector.load %arg6[%c0_10, %c0_11] : memref<32x1xf32, #tpu.memory_space<vmem>>, vector<32x1xf32>
    %c0_12 = arith.constant 0 : index
    %c0_13 = arith.constant 0 : index
    %11 = vector.load %arg7[%c0_12, %c0_13] : memref<32x1xf32, #tpu.memory_space<vmem>>, vector<32x1xf32>
    %cst_14 = arith.constant dense<0.000000e+00> : vector<128xf32>
    %12 = vector.multi_reduction <add>, %9, %cst_14 [0] : vector<32x128xf32> to vector<128xf32>
    %13 = vector.shape_cast %12 : vector<128xf32> to vector<1x128xf32>
    %cst_15 = arith.constant 3.200000e+01 : f32
    %14 = vector.broadcast %cst_15 : f32 to vector<1x128xf32>
    %15 = arith.divf %13, %14 : vector<1x128xf32>
    %16 = vector.broadcast %15 : vector<1x128xf32> to vector<32x128xf32>
    %17 = arith.subf %9, %16 : vector<32x128xf32>
    %18 = arith.mulf %17, %17 : vector<32x128xf32>
    %cst_16 = arith.constant dense<0.000000e+00> : vector<128xf32>
    %19 = vector.multi_reduction <add>, %18, %cst_16 [0] : vector<32x128xf32> to vector<128xf32>
    %20 = vector.shape_cast %19 : vector<128xf32> to vector<1x128xf32>
    %cst_17 = arith.constant 3.200000e+01 : f32
    %21 = vector.broadcast %cst_17 : f32 to vector<1x128xf32>
    %22 = arith.divf %20, %21 : vector<1x128xf32>
    %cst_18 = arith.constant 9.99999974E-6 : f32
    %23 = vector.broadcast %cst_18 : f32 to vector<1x128xf32>
    %24 = arith.addf %22, %23 : vector<1x128xf32>
    %25 = math.rsqrt %24 : vector<1x128xf32>
    %26 = vector.broadcast %25 : vector<1x128xf32> to vector<32x128xf32>
    %27 = arith.mulf %17, %26 : vector<32x128xf32>
    %28 = vector.broadcast %10 : vector<32x1xf32> to vector<32x128xf32>
    %29 = arith.mulf %27, %28 : vector<32x128xf32>
    %30 = vector.broadcast %11 : vector<32x1xf32> to vector<32x128xf32>
    %31 = arith.addf %29, %30 : vector<32x128xf32>
    %32 = math.tanh %31 : vector<32x128xf32>
    %c0_19 = arith.constant 0 : index
    %c0_20 = arith.constant 0 : index
    %33 = vector.load %arg8[%c0_19, %c0_20] : memref<32x32xf32, #tpu.memory_space<vmem>>, vector<32x32xf32>
    %cst_21 = arith.constant dense<0.000000e+00> : vector<32x128xf32>
    %34 = tpu.matmul %33, %32, %cst_21 {dimension_numbers = #tpu.dot_dimension_numbers<[1], [0], [0], [1], [0, 0, 1, 1], [], []>} : vector<32x32xf32>, vector<32x128xf32>, vector<32x128xf32> -> vector<32x128xf32>
    %c0_22 = arith.constant 0 : index
    %c0_23 = arith.constant 0 : index
    %35 = vector.load %arg9[%c0_22, %c0_23] : memref<32x1xf32, #tpu.memory_space<vmem>>, vector<32x1xf32>
    %36 = vector.broadcast %35 : vector<32x1xf32> to vector<32x128xf32>
    %37 = arith.addf %34, %36 : vector<32x128xf32>
    %c0_24 = arith.constant 0 : index
    %c0_25 = arith.constant 0 : index
    %38 = vector.load %arg10[%c0_24, %c0_25] : memref<32x1xf32, #tpu.memory_space<vmem>>, vector<32x1xf32>
    %c0_26 = arith.constant 0 : index
    %c0_27 = arith.constant 0 : index
    %39 = vector.load %arg11[%c0_26, %c0_27] : memref<32x1xf32, #tpu.memory_space<vmem>>, vector<32x1xf32>
    %cst_28 = arith.constant dense<0.000000e+00> : vector<128xf32>
    %40 = vector.multi_reduction <add>, %37, %cst_28 [0] : vector<32x128xf32> to vector<128xf32>
    %41 = vector.shape_cast %40 : vector<128xf32> to vector<1x128xf32>
    %cst_29 = arith.constant 3.200000e+01 : f32
    %42 = vector.broadcast %cst_29 : f32 to vector<1x128xf32>
    %43 = arith.divf %41, %42 : vector<1x128xf32>
    %44 = vector.broadcast %43 : vector<1x128xf32> to vector<32x128xf32>
    %45 = arith.subf %37, %44 : vector<32x128xf32>
    %46 = arith.mulf %45, %45 : vector<32x128xf32>
    %cst_30 = arith.constant dense<0.000000e+00> : vector<128xf32>
    %47 = vector.multi_reduction <add>, %46, %cst_30 [0] : vector<32x128xf32> to vector<128xf32>
    %48 = vector.shape_cast %47 : vector<128xf32> to vector<1x128xf32>
    %cst_31 = arith.constant 3.200000e+01 : f32
    %49 = vector.broadcast %cst_31 : f32 to vector<1x128xf32>
    %50 = arith.divf %48, %49 : vector<1x128xf32>
    %cst_32 = arith.constant 9.99999974E-6 : f32
    %51 = vector.broadcast %cst_32 : f32 to vector<1x128xf32>
    %52 = arith.addf %50, %51 : vector<1x128xf32>
    %53 = math.rsqrt %52 : vector<1x128xf32>
    %54 = vector.broadcast %53 : vector<1x128xf32> to vector<32x128xf32>
    %55 = arith.mulf %45, %54 : vector<32x128xf32>
    %56 = vector.broadcast %38 : vector<32x1xf32> to vector<32x128xf32>
    %57 = arith.mulf %55, %56 : vector<32x128xf32>
    %58 = vector.broadcast %39 : vector<32x1xf32> to vector<32x128xf32>
    %59 = arith.addf %57, %58 : vector<32x128xf32>
    %60 = math.tanh %59 : vector<32x128xf32>
    %c0_33 = arith.constant 0 : index
    %c0_34 = arith.constant 0 : index
    %61 = vector.load %arg12[%c0_33, %c0_34] : memref<32x32xf32, #tpu.memory_space<vmem>>, vector<32x32xf32>
    %cst_35 = arith.constant dense<0.000000e+00> : vector<32x128xf32>
    %62 = tpu.matmul %61, %60, %cst_35 {dimension_numbers = #tpu.dot_dimension_numbers<[1], [0], [0], [1], [0, 0, 1, 1], [], []>} : vector<32x32xf32>, vector<32x128xf32>, vector<32x128xf32> -> vector<32x128xf32>
    %c0_36 = arith.constant 0 : index
    %c0_37 = arith.constant 0 : index
    %63 = vector.load %arg13[%c0_36, %c0_37] : memref<32x1xf32, #tpu.memory_space<vmem>>, vector<32x1xf32>
    %64 = vector.broadcast %63 : vector<32x1xf32> to vector<32x128xf32>
    %65 = arith.addf %62, %64 : vector<32x128xf32>
    %c0_38 = arith.constant 0 : index
    %c0_39 = arith.constant 0 : index
    %66 = vector.load %arg14[%c0_38, %c0_39] : memref<32x1xf32, #tpu.memory_space<vmem>>, vector<32x1xf32>
    %c0_40 = arith.constant 0 : index
    %c0_41 = arith.constant 0 : index
    %67 = vector.load %arg15[%c0_40, %c0_41] : memref<32x1xf32, #tpu.memory_space<vmem>>, vector<32x1xf32>
    %cst_42 = arith.constant dense<0.000000e+00> : vector<128xf32>
    %68 = vector.multi_reduction <add>, %65, %cst_42 [0] : vector<32x128xf32> to vector<128xf32>
    %69 = vector.shape_cast %68 : vector<128xf32> to vector<1x128xf32>
    %cst_43 = arith.constant 3.200000e+01 : f32
    %70 = vector.broadcast %cst_43 : f32 to vector<1x128xf32>
    %71 = arith.divf %69, %70 : vector<1x128xf32>
    %72 = vector.broadcast %71 : vector<1x128xf32> to vector<32x128xf32>
    %73 = arith.subf %65, %72 : vector<32x128xf32>
    %74 = arith.mulf %73, %73 : vector<32x128xf32>
    %cst_44 = arith.constant dense<0.000000e+00> : vector<128xf32>
    %75 = vector.multi_reduction <add>, %74, %cst_44 [0] : vector<32x128xf32> to vector<128xf32>
    %76 = vector.shape_cast %75 : vector<128xf32> to vector<1x128xf32>
    %cst_45 = arith.constant 3.200000e+01 : f32
    %77 = vector.broadcast %cst_45 : f32 to vector<1x128xf32>
    %78 = arith.divf %76, %77 : vector<1x128xf32>
    %cst_46 = arith.constant 9.99999974E-6 : f32
    %79 = vector.broadcast %cst_46 : f32 to vector<1x128xf32>
    %80 = arith.addf %78, %79 : vector<1x128xf32>
    %81 = math.rsqrt %80 : vector<1x128xf32>
    %82 = vector.broadcast %81 : vector<1x128xf32> to vector<32x128xf32>
    %83 = arith.mulf %73, %82 : vector<32x128xf32>
    %84 = vector.broadcast %66 : vector<32x1xf32> to vector<32x128xf32>
    %85 = arith.mulf %83, %84 : vector<32x128xf32>
    %86 = vector.broadcast %67 : vector<32x1xf32> to vector<32x128xf32>
    %87 = arith.addf %85, %86 : vector<32x128xf32>
    %88 = math.tanh %87 : vector<32x128xf32>
    %c0_47 = arith.constant 0 : index
    %c0_48 = arith.constant 0 : index
    %89 = vector.load %arg16[%c0_47, %c0_48] : memref<32x1xf32, #tpu.memory_space<vmem>>, vector<32x1xf32>
    %90 = vector.broadcast %89 : vector<32x1xf32> to vector<32x128xf32>
    %91 = arith.mulf %88, %90 : vector<32x128xf32>
    %cst_49 = arith.constant dense<0.000000e+00> : vector<128xf32>
    %92 = vector.multi_reduction <add>, %91, %cst_49 [0] : vector<32x128xf32> to vector<128xf32>
    %93 = vector.shape_cast %92 : vector<128xf32> to vector<1x128xf32>
    %c0_50 = arith.constant 0 : index
    %c0_51 = arith.constant 0 : index
    %94 = vector.load %arg17[%c0_50, %c0_51] : memref<1x1xf32, #tpu.memory_space<vmem>>, vector<1x1xf32>
    %95 = vector.broadcast %94 : vector<1x1xf32> to vector<1x128xf32>
    %96 = arith.addf %93, %95 : vector<1x128xf32>
    %c0_52 = arith.constant 0 : index
    %c0_53 = arith.constant 0 : index
    %97 = vector.load %arg18[%c0_52, %c0_53] : memref<1x128xf32, #tpu.memory_space<vmem>>, vector<1x128xf32>
    tpu.vector_store %arg18[%c0_52, %c0_53], %96 {strides = array<i32>} : memref<1x128xf32, #tpu.memory_space<vmem>>, vector<1x128xf32>,
    return
  }
  func.func @transform_0(%arg0: i32) -> (i32, i32) {
    %c0_i32 = arith.constant 0 : i32
    %c0_i32_0 = arith.constant 0 : i32
    return %c0_i32, %arg0 : i32, i32
  }
  func.func @transform_1(%arg0: i32) -> (i32, i32) {
    %c0_i32 = arith.constant 0 : i32
    %c0_i32_0 = arith.constant 0 : i32
    return %c0_i32, %arg0 : i32, i32
  }
  func.func @transform_2(%arg0: i32) -> (i32, i32) {
    %c0_i32 = arith.constant 0 : i32
    %c0_i32_0 = arith.constant 0 : i32
    %c0_i32_1 = arith.constant 0 : i32
    return %c0_i32, %c0_i32_0 : i32, i32
  }
  func.func @transform_3(%arg0: i32) -> (i32, i32) {
    %c0_i32 = arith.constant 0 : i32
    %c0_i32_0 = arith.constant 0 : i32
    %c0_i32_1 = arith.constant 0 : i32
    return %c0_i32, %c0_i32_0 : i32, i32
  }
  func.func @transform_4(%arg0: i32) -> (i32, i32) {
    %c0_i32 = arith.constant 0 : i32
    %c0_i32_0 = arith.constant 0 : i32
    %c0_i32_1 = arith.constant 0 : i32
    return %c0_i32, %c0_i32_0 : i32, i32
  }
  func.func @transform_5(%arg0: i32) -> (i32, i32) {
    %c0_i32 = arith.constant 0 : i32
    %c0_i32_0 = arith.constant 0 : i32
    %c0_i32_1 = arith.constant 0 : i32
    return %c0_i32, %c0_i32_0 : i32, i32
  }
  func.func @transform_6(%arg0: i32) -> (i32, i32) {
    %c0_i32 = arith.constant 0 : i32
    %c0_i32_0 = arith.constant 0 : i32
    %c0_i32_1 = arith.constant 0 : i32
    return %c0_i32, %c0_i32_0 : i32, i32
  }
  func.func @transform_7(%arg0: i32) -> (i32, i32) {
    %c0_i32 = arith.constant 0 : i32
    %c0_i32_0 = arith.constant 0 : i32
    %c0_i32_1 = arith.constant 0 : i32
    return %c0_i32, %c0_i32_0 : i32, i32
  }
  func.func @transform_8(%arg0: i32) -> (i32, i32) {
    %c0_i32 = arith.constant 0 : i32
    %c0_i32_0 = arith.constant 0 : i32
    %c0_i32_1 = arith.constant 0 : i32
    return %c0_i32, %c0_i32_0 : i32, i32
  }
  func.func @transform_9(%arg0: i32) -> (i32, i32) {
    %c0_i32 = arith.constant 0 : i32
    %c0_i32_0 = arith.constant 0 : i32
    %c0_i32_1 = arith.constant 0 : i32
    return %c0_i32, %c0_i32_0 : i32, i32
  }
  func.func @transform_10(%arg0: i32) -> (i32, i32) {
    %c0_i32 = arith.constant 0 : i32
    %c0_i32_0 = arith.constant 0 : i32
    %c0_i32_1 = arith.constant 0 : i32
    return %c0_i32, %c0_i32_0 : i32, i32
  }
  func.func @transform_11(%arg0: i32) -> (i32, i32) {
    %c0_i32 = arith.constant 0 : i32
    %c0_i32_0 = arith.constant 0 : i32
    %c0_i32_1 = arith.constant 0 : i32
    return %c0_i32, %c0_i32_0 : i32, i32
  }
  func.func @transform_12(%arg0: i32) -> (i32, i32) {
    %c0_i32 = arith.constant 0 : i32
    %c0_i32_0 = arith.constant 0 : i32
    %c0_i32_1 = arith.constant 0 : i32
    return %c0_i32, %c0_i32_0 : i32, i32
  }
  func.func @transform_13(%arg0: i32) -> (i32, i32) {
    %c0_i32 = arith.constant 0 : i32
    %c0_i32_0 = arith.constant 0 : i32
    %c0_i32_1 = arith.constant 0 : i32
    return %c0_i32, %c0_i32_0 : i32, i32
  }
  func.func @transform_14(%arg0: i32) -> (i32, i32) {
    %c0_i32 = arith.constant 0 : i32
    %c0_i32_0 = arith.constant 0 : i32
    %c0_i32_1 = arith.constant 0 : i32
    return %c0_i32, %c0_i32_0 : i32, i32
  }
  func.func @transform_15(%arg0: i32) -> (i32, i32) {
    %c0_i32 = arith.constant 0 : i32
    %c0_i32_0 = arith.constant 0 : i32
    %c0_i32_1 = arith.constant 0 : i32
    return %c0_i32, %c0_i32_0 : i32, i32
  }
  func.func @transform_16(%arg0: i32) -> (i32, i32) {
    %c0_i32 = arith.constant 0 : i32
    %c0_i32_0 = arith.constant 0 : i32
    %c0_i32_1 = arith.constant 0 : i32
    return %c0_i32, %c0_i32_0 : i32, i32
  }
  func.func @transform_17(%arg0: i32) -> (i32, i32) {
    %c0_i32 = arith.constant 0 : i32
    %c0_i32_0 = arith.constant 0 : i32
    return %c0_i32, %arg0 : i32, i32
  }
}

module attributes {stable_mosaic.version = 11 : i64} {
  func.func @_critic_kernel(%arg0: i32, %arg1: memref<8x128xf32, #tpu.memory_space<vmem>>, %arg2: memref<4x128xf32, #tpu.memory_space<vmem>>, %arg3: memref<32x8xf32, #tpu.memory_space<vmem>>, %arg4: memref<32x4xf32, #tpu.memory_space<vmem>>, %arg5: memref<32x1xf32, #tpu.memory_space<vmem>>, %arg6: memref<32x1xf32, #tpu.memory_space<vmem>>, %arg7: memref<32x1xf32, #tpu.memory_space<vmem>>, %arg8: memref<32x32xf32, #tpu.memory_space<vmem>>, %arg9: memref<32x1xf32, #tpu.memory_space<vmem>>, %arg10: memref<32x1xf32, #tpu.memory_space<vmem>>, %arg11: memref<32x1xf32, #tpu.memory_space<vmem>>, %arg12: memref<32x32xf32, #tpu.memory_space<vmem>>, %arg13: memref<32x1xf32, #tpu.memory_space<vmem>>, %arg14: memref<32x1xf32, #tpu.memory_space<vmem>>, %arg15: memref<32x1xf32, #tpu.memory_space<vmem>>, %arg16: memref<32x1xf32, #tpu.memory_space<vmem>>, %arg17: memref<1x1xf32, #tpu.memory_space<vmem>>, %arg18: memref<1x128xf32, #tpu.memory_space<vmem>>) attributes {dimension_semantics = [#tpu.dimension_semantics<parallel>], iteration_bounds = array<i64: 1>, scalar_prefetch = 0 : i64, scratch_operands = 0 : i64, tpu.core_type = #tpu.core_type<tc>, window_params = [{transform_indices = @transform_0, window_bounds = array<i64: 8, 128>}, {transform_indices = @transform_1, window_bounds = array<i64: 4, 128>}, {pipeline_mode = #tpu.pipeline_mode<synchronous>, transform_indices = @transform_2, window_bounds = array<i64: 32, 8>}, {pipeline_mode = #tpu.pipeline_mode<synchronous>, transform_indices = @transform_3, window_bounds = array<i64: 32, 4>}, {pipeline_mode = #tpu.pipeline_mode<synchronous>, transform_indices = @transform_4, window_bounds = array<i64: 32, 1>}, {pipeline_mode = #tpu.pipeline_mode<synchronous>, transform_indices = @transform_5, window_bounds = array<i64: 32, 1>}, {pipeline_mode = #tpu.pipeline_mode<synchronous>, transform_indices = @transform_6, window_bounds = array<i64: 32, 1>}, {pipeline_mode = #tpu.pipeline_mode<synchronous>, transform_indices = @transform_7, window_bounds = array<i64: 32, 32>}, {pipeline_mode = #tpu.pipeline_mode<synchronous>, transform_indices = @transform_8, window_bounds = array<i64: 32, 1>}, {pipeline_mode = #tpu.pipeline_mode<synchronous>, transform_indices = @transform_9, window_bounds = array<i64: 32, 1>}, {pipeline_mode = #tpu.pipeline_mode<synchronous>, transform_indices = @transform_10, window_bounds = array<i64: 32, 1>}, {pipeline_mode = #tpu.pipeline_mode<synchronous>, transform_indices = @transform_11, window_bounds = array<i64: 32, 32>}, {pipeline_mode = #tpu.pipeline_mode<synchronous>, transform_indices = @transform_12, window_bounds = array<i64: 32, 1>}, {pipeline_mode = #tpu.pipeline_mode<synchronous>, transform_indices = @transform_13, window_bounds = array<i64: 32, 1>}, {pipeline_mode = #tpu.pipeline_mode<synchronous>, transform_indices = @transform_14, window_bounds = array<i64: 32, 1>}, {pipeline_mode = #tpu.pipeline_mode<synchronous>, transform_indices = @transform_15, window_bounds = array<i64: 32, 1>}, {pipeline_mode = #tpu.pipeline_mode<synchronous>, transform_indices = @transform_16, window_bounds = array<i64: 1, 1>}, {transform_indices = @transform_17, window_bounds = array<i64: 1, 128>}]} {
    %c0 = arith.constant 0 : index
    %c0_0 = arith.constant 0 : index
    %0 = vector.load %arg3[%c0, %c0_0] : memref<32x8xf32, #tpu.memory_space<vmem>>, vector<32x8xf32>
    %c0_1 = arith.constant 0 : index
    %c0_2 = arith.constant 0 : index
    %1 = vector.load %arg1[%c0_1, %c0_2] : memref<8x128xf32, #tpu.memory_space<vmem>>, vector<8x128xf32>
    %cst = arith.constant dense<0.000000e+00> : vector<32x128xf32>
    %2 = tpu.matmul %0, %1, %cst {dimension_numbers = #tpu.dot_dimension_numbers<[1], [0], [0], [1], [0, 0, 1, 1], [], []>} : vector<32x8xf32>, vector<8x128xf32>, vector<32x128xf32> -> vector<32x128xf32>
    %c0_3 = arith.constant 0 : index
    %c0_4 = arith.constant 0 : index
    %3 = vector.load %arg4[%c0_3, %c0_4] : memref<32x4xf32, #tpu.memory_space<vmem>>, vector<32x4xf32>
    %c0_5 = arith.constant 0 : index
    %c0_6 = arith.constant 0 : index
    %4 = vector.load %arg2[%c0_5, %c0_6] : memref<4x128xf32, #tpu.memory_space<vmem>>, vector<4x128xf32>
    %cst_7 = arith.constant dense<0.000000e+00> : vector<32x128xf32>
    %5 = tpu.matmul %3, %4, %cst_7 {dimension_numbers = #tpu.dot_dimension_numbers<[1], [0], [0], [1], [0, 0, 1, 1], [], []>} : vector<32x4xf32>, vector<4x128xf32>, vector<32x128xf32> -> vector<32x128xf32>
    %6 = arith.addf %2, %5 : vector<32x128xf32>
    %c0_8 = arith.constant 0 : index
    %c0_9 = arith.constant 0 : index
    %7 = vector.load %arg5[%c0_8, %c0_9] : memref<32x1xf32, #tpu.memory_space<vmem>>, vector<32x1xf32>
    %8 = vector.broadcast %7 : vector<32x1xf32> to vector<32x128xf32>
    %9 = arith.addf %6, %8 : vector<32x128xf32>
    %c0_10 = arith.constant 0 : index
    %c0_11 = arith.constant 0 : index
    %10 = vector.load %arg6[%c0_10, %c0_11] : memref<32x1xf32, #tpu.memory_space<vmem>>, vector<32x1xf32>
    %c0_12 = arith.constant 0 : index
    %c0_13 = arith.constant 0 : index
    %11 = vector.load %arg7[%c0_12, %c0_13] : memref<32x1xf32, #tpu.memory_space<vmem>>, vector<32x1xf32>
    %cst_14 = arith.constant dense<0.000000e+00> : vector<128xf32>
    %12 = vector.multi_reduction <add>, %9, %cst_14 [0] : vector<32x128xf32> to vector<128xf32>
    %13 = vector.shape_cast %12 : vector<128xf32> to vector<1x128xf32>
    %cst_15 = arith.constant 3.200000e+01 : f32
    %14 = vector.broadcast %cst_15 : f32 to vector<1x128xf32>
    %15 = arith.divf %13, %14 : vector<1x128xf32>
    %16 = vector.broadcast %15 : vector<1x128xf32> to vector<32x128xf32>
    %17 = arith.subf %9, %16 : vector<32x128xf32>
    %18 = arith.mulf %17, %17 : vector<32x128xf32>
    %cst_16 = arith.constant dense<0.000000e+00> : vector<128xf32>
    %19 = vector.multi_reduction <add>, %18, %cst_16 [0] : vector<32x128xf32> to vector<128xf32>
    %20 = vector.shape_cast %19 : vector<128xf32> to vector<1x128xf32>
    %cst_17 = arith.constant 3.200000e+01 : f32
    %21 = vector.broadcast %cst_17 : f32 to vector<1x128xf32>
    %22 = arith.divf %20, %21 : vector<1x128xf32>
    %cst_18 = arith.constant 9.99999974E-6 : f32
    %23 = vector.broadcast %cst_18 : f32 to vector<1x128xf32>
    %24 = arith.addf %22, %23 : vector<1x128xf32>
    %25 = math.rsqrt %24 : vector<1x128xf32>
    %26 = vector.broadcast %25 : vector<1x128xf32> to vector<32x128xf32>
    %27 = arith.mulf %17, %26 : vector<32x128xf32>
    %28 = vector.broadcast %10 : vector<32x1xf32> to vector<32x128xf32>
    %29 = arith.mulf %27, %28 : vector<32x128xf32>
    %30 = vector.broadcast %11 : vector<32x1xf32> to vector<32x128xf32>
    %31 = arith.addf %29, %30 : vector<32x128xf32>
    %32 = math.tanh %31 : vector<32x128xf32>
    %c0_19 = arith.constant 0 : index
    %c0_20 = arith.constant 0 : index
    %33 = vector.load %arg8[%c0_19, %c0_20] : memref<32x32xf32, #tpu.memory_space<vmem>>, vector<32x32xf32>
    %cst_21 = arith.constant dense<0.000000e+00> : vector<32x128xf32>
    %34 = tpu.matmul %33, %32, %cst_21 {dimension_numbers = #tpu.dot_dimension_numbers<[1], [0], [0], [1], [0, 0, 1, 1], [], []>} : vector<32x32xf32>, vector<32x128xf32>, vector<32x128xf32> -> vector<32x128xf32>
    %c0_22 = arith.constant 0 : index
    %c0_23 = arith.constant 0 : index
    %35 = vector.load %arg9[%c0_22, %c0_23] : memref<32x1xf32, #tpu.memory_space<vmem>>, vector<32x1xf32>
    %36 = vector.broadcast %35 : vector<32x1xf32> to vector<32x128xf32>
    %37 = arith.addf %34, %36 : vector<32x128xf32>
    %c0_24 = arith.constant 0 : index
    %c0_25 = arith.constant 0 : index
    %38 = vector.load %arg10[%c0_24, %c0_25] : memref<32x1xf32, #tpu.memory_space<vmem>>, vector<32x1xf32>
    %c0_26 = arith.constant 0 : index
    %c0_27 = arith.constant 0 : index
    %39 = vector.load %arg11[%c0_26, %c0_27] : memref<32x1xf32, #tpu.memory_space<vmem>>, vector<32x1xf32>
    %cst_28 = arith.constant dense<0.000000e+00> : vector<128xf32>
    %40 = vector.multi_reduction <add>, %37, %cst_28 [0] : vector<32x128xf32> to vector<128xf32>
    %41 = vector.shape_cast %40 : vector<128xf32> to vector<1x128xf32>
    %cst_29 = arith.constant 3.200000e+01 : f32
    %42 = vector.broadcast %cst_29 : f32 to vector<1x128xf32>
    %43 = arith.divf %41, %42 : vector<1x128xf32>
    %44 = vector.broadcast %43 : vector<1x128xf32> to vector<32x128xf32>
    %45 = arith.subf %37, %44 : vector<32x128xf32>
    %46 = arith.mulf %45, %45 : vector<32x128xf32>
    %cst_30 = arith.constant dense<0.000000e+00> : vector<128xf32>
    %47 = vector.multi_reduction <add>, %46, %cst_30 [0] : vector<32x128xf32> to vector<128xf32>
    %48 = vector.shape_cast %47 : vector<128xf32> to vector<1x128xf32>
    %cst_31 = arith.constant 3.200000e+01 : f32
    %49 = vector.broadcast %cst_31 : f32 to vector<1x128xf32>
    %50 = arith.divf %48, %49 : vector<1x128xf32>
    %cst_32 = arith.constant 9.99999974E-6 : f32
    %51 = vector.broadcast %cst_32 : f32 to vector<1x128xf32>
    %52 = arith.addf %50, %51 : vector<1x128xf32>
    %53 = math.rsqrt %52 : vector<1x128xf32>
    %54 = vector.broadcast %53 : vector<1x128xf32> to vector<32x128xf32>
    %55 = arith.mulf %45, %54 : vector<32x128xf32>
    %56 = vector.broadcast %38 : vector<32x1xf32> to vector<32x128xf32>
    %57 = arith.mulf %55, %56 : vector<32x128xf32>
    %58 = vector.broadcast %39 : vector<32x1xf32> to vector<32x128xf32>
    %59 = arith.addf %57, %58 : vector<32x128xf32>
    %60 = math.tanh %59 : vector<32x128xf32>
    %c0_33 = arith.constant 0 : index
    %c0_34 = arith.constant 0 : index
    %61 = vector.load %arg12[%c0_33, %c0_34] : memref<32x32xf32, #tpu.memory_space<vmem>>, vector<32x32xf32>
    %cst_35 = arith.constant dense<0.000000e+00> : vector<32x128xf32>
    %62 = tpu.matmul %61, %60, %cst_35 {dimension_numbers = #tpu.dot_dimension_numbers<[1], [0], [0], [1], [0, 0, 1, 1], [], []>} : vector<32x32xf32>, vector<32x128xf32>, vector<32x128xf32> -> vector<32x128xf32>
    %c0_36 = arith.constant 0 : index
    %c0_37 = arith.constant 0 : index
    %63 = vector.load %arg13[%c0_36, %c0_37] : memref<32x1xf32, #tpu.memory_space<vmem>>, vector<32x1xf32>
    %64 = vector.broadcast %63 : vector<32x1xf32> to vector<32x128xf32>
    %65 = arith.addf %62, %64 : vector<32x128xf32>
    %c0_38 = arith.constant 0 : index
    %c0_39 = arith.constant 0 : index
    %66 = vector.load %arg14[%c0_38, %c0_39] : memref<32x1xf32, #tpu.memory_space<vmem>>, vector<32x1xf32>
    %c0_40 = arith.constant 0 : index
    %c0_41 = arith.constant 0 : index
    %67 = vector.load %arg15[%c0_40, %c0_41] : memref<32x1xf32, #tpu.memory_space<vmem>>, vector<32x1xf32>
    %cst_42 = arith.constant dense<0.000000e+00> : vector<128xf32>
    %68 = vector.multi_reduction <add>, %65, %cst_42 [0] : vector<32x128xf32> to vector<128xf32>
    %69 = vector.shape_cast %68 : vector<128xf32> to vector<1x128xf32>
    %cst_43 = arith.constant 3.200000e+01 : f32
    %70 = vector.broadcast %cst_43 : f32 to vector<1x128xf32>
    %71 = arith.divf %69, %70 : vector<1x128xf32>
    %72 = vector.broadcast %71 : vector<1x128xf32> to vector<32x128xf32>
    %73 = arith.subf %65, %72 : vector<32x128xf32>
    %74 = arith.mulf %73, %73 : vector<32x128xf32>
    %cst_44 = arith.constant dense<0.000000e+00> : vector<128xf32>
    %75 = vector.multi_reduction <add>, %74, %cst_44 [0] : vector<32x128xf32> to vector<128xf32>
    %76 = vector.shape_cast %75 : vector<128xf32> to vector<1x128xf32>
    %cst_45 = arith.constant 3.200000e+01 : f32
    %77 = vector.broadcast %cst_45 : f32 to vector<1x128xf32>
    %78 = arith.divf %76, %77 : vector<1x128xf32>
    %cst_46 = arith.constant 9.99999974E-6 : f32
    %79 = vector.broadcast %cst_46 : f32 to vector<1x128xf32>
    %80 = arith.addf %78, %79 : vector<1x128xf32>
    %81 = math.rsqrt %80 : vector<1x128xf32>
    %82 = vector.broadcast %81 : vector<1x128xf32> to vector<32x128xf32>
    %83 = arith.mulf %73, %82 : vector<32x128xf32>
    %84 = vector.broadcast %66 : vector<32x1xf32> to vector<32x128xf32>
    %85 = arith.mulf %83, %84 : vector<32x128xf32>
    %86 = vector.broadcast %67 : vector<32x1xf32> to vector<32x128xf32>
    %87 = arith.addf %85, %86 : vector<32x128xf32>
    %88 = math.tanh %87 : vector<32x128xf32>
    %c0_47 = arith.constant 0 : index
    %c0_48 = arith.constant 0 : index
    %89 = vector.load %arg16[%c0_47, %c0_48] : memref<32x1xf32, #tpu.memory_space<vmem>>, vector<32x1xf32>
    %90 = vector.broadcast %89 : vector<32x1xf32> to vector<32x128xf32>
    %91 = arith.mulf %88, %90 : vector<32x128xf32>
    %cst_49 = arith.constant dense<0.000000e+00> : vector<128xf32>
    %92 = vector.multi_reduction <add>, %91, %cst_49 [0] : vector<32x128xf32> to vector<128xf32>
    %93 = vector.shape_cast %92 : vector<128xf32> to vector<1x128xf32>
    %c0_50 = arith.constant 0 : index
    %c0_51 = arith.constant 0 : index
    %94 = vector.load %arg17[%c0_50, %c0_51] : memref<1x1xf32, #tpu.memory_space<vmem>>, vector<1x1xf32>
    %95 = vector.broadcast %94 : vector<1x1xf32> to vector<1x128xf32>
    %96 = arith.addf %93, %95 : vector<1x128xf32>
    %c0_52 = arith.constant 0 : index
    %c0_53 = arith.constant 0 : index
    %97 = vector.load %arg18[%c0_52, %c0_53] : memref<1x128xf32, #tpu.memory_space<vmem>>, vector<1x128xf32>
    tpu.vector_store %arg18[%c0_52, %c0_53], %96 {strides = array<i32>} : memref<1x128xf32, #tpu.memory_space<vmem>>, vector<1x128xf32>,
    return
  }
  func.func @transform_0(%arg0: i32) -> (i32, i32) {
    %c0_i32 = arith.constant 0 : i32
    %c0_i32_0 = arith.constant 0 : i32
    return %c0_i32, %arg0 : i32, i32
  }
  func.func @transform_1(%arg0: i32) -> (i32, i32) {
    %c0_i32 = arith.constant 0 : i32
    %c0_i32_0 = arith.constant 0 : i32
    return %c0_i32, %arg0 : i32, i32
  }
  func.func @transform_2(%arg0: i32) -> (i32, i32) {
    %c0_i32 = arith.constant 0 : i32
    %c0_i32_0 = arith.constant 0 : i32
    %c0_i32_1 = arith.constant 0 : i32
    return %c0_i32, %c0_i32_0 : i32, i32
  }
  func.func @transform_3(%arg0: i32) -> (i32, i32) {
    %c0_i32 = arith.constant 0 : i32
    %c0_i32_0 = arith.constant 0 : i32
    %c0_i32_1 = arith.constant 0 : i32
    return %c0_i32, %c0_i32_0 : i32, i32
  }
  func.func @transform_4(%arg0: i32) -> (i32, i32) {
    %c0_i32 = arith.constant 0 : i32
    %c0_i32_0 = arith.constant 0 : i32
    %c0_i32_1 = arith.constant 0 : i32
    return %c0_i32, %c0_i32_0 : i32, i32
  }
  func.func @transform_5(%arg0: i32) -> (i32, i32) {
    %c0_i32 = arith.constant 0 : i32
    %c0_i32_0 = arith.constant 0 : i32
    %c0_i32_1 = arith.constant 0 : i32
    return %c0_i32, %c0_i32_0 : i32, i32
  }
  func.func @transform_6(%arg0: i32) -> (i32, i32) {
    %c0_i32 = arith.constant 0 : i32
    %c0_i32_0 = arith.constant 0 : i32
    %c0_i32_1 = arith.constant 0 : i32
    return %c0_i32, %c0_i32_0 : i32, i32
  }
  func.func @transform_7(%arg0: i32) -> (i32, i32) {
    %c0_i32 = arith.constant 0 : i32
    %c0_i32_0 = arith.constant 0 : i32
    %c0_i32_1 = arith.constant 0 : i32
    return %c0_i32, %c0_i32_0 : i32, i32
  }
  func.func @transform_8(%arg0: i32) -> (i32, i32) {
    %c0_i32 = arith.constant 0 : i32
    %c0_i32_0 = arith.constant 0 : i32
    %c0_i32_1 = arith.constant 0 : i32
    return %c0_i32, %c0_i32_0 : i32, i32
  }
  func.func @transform_9(%arg0: i32) -> (i32, i32) {
    %c0_i32 = arith.constant 0 : i32
    %c0_i32_0 = arith.constant 0 : i32
    %c0_i32_1 = arith.constant 0 : i32
    return %c0_i32, %c0_i32_0 : i32, i32
  }
  func.func @transform_10(%arg0: i32) -> (i32, i32) {
    %c0_i32 = arith.constant 0 : i32
    %c0_i32_0 = arith.constant 0 : i32
    %c0_i32_1 = arith.constant 0 : i32
    return %c0_i32, %c0_i32_0 : i32, i32
  }
  func.func @transform_11(%arg0: i32) -> (i32, i32) {
    %c0_i32 = arith.constant 0 : i32
    %c0_i32_0 = arith.constant 0 : i32
    %c0_i32_1 = arith.constant 0 : i32
    return %c0_i32, %c0_i32_0 : i32, i32
  }
  func.func @transform_12(%arg0: i32) -> (i32, i32) {
    %c0_i32 = arith.constant 0 : i32
    %c0_i32_0 = arith.constant 0 : i32
    %c0_i32_1 = arith.constant 0 : i32
    return %c0_i32, %c0_i32_0 : i32, i32
  }
  func.func @transform_13(%arg0: i32) -> (i32, i32) {
    %c0_i32 = arith.constant 0 : i32
    %c0_i32_0 = arith.constant 0 : i32
    %c0_i32_1 = arith.constant 0 : i32
    return %c0_i32, %c0_i32_0 : i32, i32
  }
  func.func @transform_14(%arg0: i32) -> (i32, i32) {
    %c0_i32 = arith.constant 0 : i32
    %c0_i32_0 = arith.constant 0 : i32
    %c0_i32_1 = arith.constant 0 : i32
    return %c0_i32, %c0_i32_0 : i32, i32
  }
  func.func @transform_15(%arg0: i32) -> (i32, i32) {
    %c0_i32 = arith.constant 0 : i32
    %c0_i32_0 = arith.constant 0 : i32
    %c0_i32_1 = arith.constant 0 : i32
    return %c0_i32, %c0_i32_0 : i32, i32
  }
  func.func @transform_16(%arg0: i32) -> (i32, i32) {
    %c0_i32 = arith.constant 0 : i32
    %c0_i32_0 = arith.constant 0 : i32
    %c0_i32_1 = arith.constant 0 : i32
    return %c0_i32, %c0_i32_0 : i32, i32
  }
  func.func @transform_17(%arg0: i32) -> (i32, i32) {
    %c0_i32 = arith.constant 0 : i32
    %c0_i32_0 = arith.constant 0 : i32
    return %c0_i32, %arg0 : i32, i32
  }
}

</mosaic_0001>

<bundles_post_ra>
// kernel: tpu_custom_call.1
= control target key start
LH: loop header
LB: loop body
LE: loop exit
PB: predicated region body
PF: predicated region fallthrough
CT: control target
= control target key end

     0   :  { %s1327_s0 = inlined_call_operand.vmem [shape: f32[8,128], index: 0, kind: input, shape index: {}]   ;;  %s1328_s1 = inlined_call_operand.vmem [shape: f32[4,128], index: 1, kind: input, shape index: {}]   ;;  %s1329_s2 = inlined_call_operand.vmem [shape: f32[32,8], index: 2, kind: input, shape index: {}]   ;;  %s1330_s3 = inlined_call_operand.vmem [shape: f32[32,4], index: 3, kind: input, shape index: {}]   ;;  %s1331_s4 = inlined_call_operand.vmem [shape: f32[32,1], index: 4, kind: input, shape index: {}]   ;;  %s1332_s5 = inlined_call_operand.vmem [shape: f32[32,1], index: 5, kind: input, shape index: {}]   ;;  %s1333_s6 = inlined_call_operand.vmem [shape: f32[32,1], index: 6, kind: input, shape index: {}]   ;;  %s1334_s7 = inlined_call_operand.vmem [shape: f32[32,32], index: 7, kind: input, shape index: {}]   ;;  %s1335_s8 = inlined_call_operand.vmem [shape: f32[32,1], index: 8, kind: input, shape index: {}]   ;;  %s1336_s9 = inlined_call_operand.vmem [shape: f32[32,1], index: 9, kind: input, shape index: {}]   ;;  %s1337_s10 = inlined_call_operand.vmem [shape: f32[32,1], index: 10, kind: input, shape index: {}]   ;;  %s1338_s11 = inlined_call_operand.vmem [shape: f32[32,32], index: 11, kind: input, shape index: {}]   ;;  %s1339_s12 = inlined_call_operand.vmem [shape: f32[32,1], index: 12, kind: input, shape index: {}]   ;;  %s1340_s13 = inlined_call_operand.vmem [shape: f32[32,1], index: 13, kind: input, shape index: {}]   ;;  %s1341_s14 = inlined_call_operand.vmem [shape: f32[32,1], index: 14, kind: input, shape index: {}]   ;;  %s1342_s15 = inlined_call_operand.vmem [shape: f32[32,1], index: 15, kind: input, shape index: {}]   ;;  %s1343_s16 = inlined_call_operand.<no memory space> [shape: f32[1,1], index: 16, kind: input, shape index: {}]   ;;  %s1344_s17 = inlined_call_operand.hbm [shape: f32[1,128], index: 17, kind: output, shape index: {}]  }
   0x1   :  { %1345 = sst [smem:[#allocation6_spill]] %s1327_s0  ;;  %v22_v0 = vstv %s1343_s16 }
   0x2   :  { %1346 = sst [smem:[#allocation7_spill]] %s1328_s1  ;;  %23 = vst [vmem:[#allocation2] sm:$0x1] %v22_v0 }
   0x3   :  { %s1347_s28 = sld [smem:[#allocation7_spill]]  ;;  %vm82_vm0 = vcmask 1043456   ;;  %v271_v3 = vld [vmem:[%s1331_s4 + $0x10] sm:$0xff]  ;;  %v1037_v4 = vmov 0   ;;  %v269_v5 = vld [vmem:[%s1331_s4] sm:$0xff]  ;;  %vm69_vm1 = vcmask 31744  }
   0x4   :  { %s1348_s30 = sld [smem:[#allocation6_spill]]  ;;  %984 = vset.pattern.permute.xlu1 %v1037_v4  ;;  %983 = vset.pattern.permute.xlu0 %v1037_v4  ;;  %v64_v6 = vld [vmem:[%s1330_s3] sm:$0xff]  ;;  %vm171_vm2 = vcmask 64512   ;;  %v65_v8 = vld [vmem:[%s1330_s3 + $0x8] sm:$0xff]  ;;  %v272_v10 = vld [vmem:[%s1331_s4 + $0x18] sm:$0xff] }
   0x5   :  { %v59_v7 = vld [vmem:[%s1329_s2] sm:$0xff]  ;;  %285 = vperm.xlu1 %984, %v271_v3   ;;  %275 = vperm.xlu0 %983, %v269_v5   ;;  %v60_v9 = vld [vmem:[%s1329_s2 + $0x8] sm:$0xff]  ;;  %v66_v12 = vld [vmem:[%s1330_s3 + $0x10] sm:$0xff] }
   0x6   :  { %939 = vmatprep.mubr.msk.f32.mxu0 %vm69_vm1, %v64_v6  ;;  %v270_v11 = vld [vmem:[%s1331_s4 + $0x8] sm:$0xff]  ;;  %947 = vmatprep.mubr.msk.f32.mxu1 %vm171_vm2, %v59_v7  ;;  %v61_v13 = vld [vmem:[%s1329_s2 + $0x10] sm:$0xff]  ;;  %v67_v14 = vld [vmem:[%s1330_s3 + $0x18] sm:$0xff] }
   0x7   :  { %v62_v15 = vld [vmem:[%s1329_s2 + $0x18] sm:$0xff]  ;;  %v299_v16 = vld [vmem:[%s1332_s5 + $0x10] sm:$0xff]  ;;  %v298_v18 = vld [vmem:[%s1332_s5 + $0x8] sm:$0xff] }
   0x8   :  { %v300_v17 = vld [vmem:[%s1332_s5 + $0x18] sm:$0xff]  ;;  %v297_v20 = vld [vmem:[%s1332_s5] sm:$0xff]  ;;  %v303_v21 = vld [vmem:[%s1333_s6 + $0x10] sm:$0xff] }
   0x9   :  { %v68_v1 = vld [vmem:[%s1347_s28] sm:$0xf]  ;;  %290 = vperm.xlu1 %984, %v272_v10   ;;  %280 = vperm.xlu0 %983, %v270_v11   ;;  %v304_v19 = vld [vmem:[%s1333_s6 + $0x18] sm:$0xff] }
   0xa   :  { %v63_v2 = vld [vmem:[%s1348_s30] sm:$0xff]  ;;  %937 = vmatprep.subr.msk.mxu0 %vm82_vm0, %v68_v1 }
   0xb   :  { %945 = vmatprep.subr.mxu1 %v63_v2  ;;  %938 = vmatpush3.msk.msra.mxu0 %vm82_vm0, %v68_v1 }
   0xc   :  { %946 = vmatpush3.msra.mxu1 %v63_v2  ;;  %940 = vmatmul.mubr.msk.f32.vlgmr.msra.gmra.mxu0 %vm69_vm1, %v65_v8 }
   0xd   :  { %948 = vmatmul.mubr.msk.f32.vlgmr.msra.gmra.mxu1 %vm171_vm2, %v60_v9  ;;  %942 = vmatprep.mubr.msk.f32.mxu0 %vm69_vm1, %v66_v12 }
   0xe   :  { %950 = vmatprep.mubr.msk.f32.mxu1 %vm171_vm2, %v61_v13  ;;  %352 = vperm.xlu1 %984, %v299_v16  }
   0xf   :  { %357 = vperm.xlu0 %983, %v300_v17  }
  0x10   :  { %943 = vmatmul.mubr.msk.f32.gmra.mxu0 %vm69_vm1, %v67_v14 }
  0x11   :  { %951 = vmatmul.mubr.msk.f32.gmra.mxu1 %vm171_vm2, %v62_v15 }
  0x12   :  { %347 = vperm.xlu1 %984, %v298_v18  }
  0x13   :  { %381 = vperm.xlu0 %983, %v304_v19  }
  0x14   :  { %24 = vsyncpa [#allocation4], 0  ;;  %v301_v22 = vld [vmem:[%s1333_s6] sm:$0xff]  ;;  %v302_v23 = vld [vmem:[%s1333_s6 + $0x8] sm:$0xff]  ;;  %vm420_vm3 = vcmask 261120  }
  0x15   :  { %v397_v24 = vld [vmem:[%s1335_s8 + $0x8] sm:$0xff]  ;;  %v396_v25 = vld [vmem:[%s1335_s8] sm:$0xff]  ;;  %v399_v26 = vld [vmem:[%s1335_s8 + $0x18] sm:$0xff] }
  0x16   :  { %342 = vperm.xlu1 %984, %v297_v20   ;;  %v398_v27 = vld [vmem:[%s1335_s8 + $0x10] sm:$0xff]  ;;  %v521_v29 = vld [vmem:[%s1336_s9 + $0x18] sm:$0xff]  ;;  %v519_v30 = vld [vmem:[%s1336_s9 + $0x8] sm:$0xff] }
  0x17   :  { %376 = vperm.xlu0 %983, %v303_v21   ;;  %v520_v28 = vld [vmem:[%s1336_s9 + $0x10] sm:$0xff]  ;;  %v525_v31 = vld [vmem:[%s1337_s10 + $0x18] sm:$0xff]  ;;  %v518_v32 = vld [vmem:[%s1336_s9] sm:$0xff] }
  0x18   :  { %v524_v33 = vld [vmem:[%s1337_s10 + $0x10] sm:$0xff]  ;;  %v522_v34 = vld [vmem:[%s1337_s10] sm:$0xff]  ;;  %v523_v35 = vld [vmem:[%s1337_s10 + $0x8] sm:$0xff] }
  0x19   :  { %v617_v36 = vld [vmem:[%s1339_s12 + $0x8] sm:$0xff]  ;;  %v616_v37 = vld [vmem:[%s1339_s12] sm:$0xff]  ;;  %v619_v38 = vld [vmem:[%s1339_s12 + $0x18] sm:$0xff] }
  0x1a   :  { %366 = vperm.xlu1 %984, %v301_v22   ;;  %v618_v39 = vld [vmem:[%s1339_s12 + $0x10] sm:$0xff]  ;;  %v738_v40 = vld [vmem:[%s1340_s13 + $0x8] sm:$0xff]  ;;  %v737_v41 = vld [vmem:[%s1340_s13] sm:$0xff] }
  0x1b   :  { %371 = vperm.xlu0 %983, %v302_v23   ;;  %v741_v42 = vld [vmem:[%s1341_s14] sm:$0xff]  ;;  %v739_v43 = vld [vmem:[%s1340_s13 + $0x10] sm:$0xff]  ;;  %v740_v44 = vld [vmem:[%s1340_s13 + $0x18] sm:$0xff] }
  0x1c   :  { %v742_v45 = vld [vmem:[%s1341_s14 + $0x8] sm:$0xff]  ;;  %v744_v46 = vld [vmem:[%s1341_s14 + $0x18] sm:$0xff]  ;;  %v743_v47 = vld [vmem:[%s1341_s14 + $0x10] sm:$0xff] }
  0x1d   :  { %v832_v48 = vld [vmem:[%s1342_s15 + $0x8] sm:$0xff]  ;;  %v831_v49 = vld [vmem:[%s1342_s15] sm:$0xff]  ;;  %v834_v50 = vld [vmem:[%s1342_s15 + $0x18] sm:$0xff] }
  0x1e   :  { %407 = vperm.xlu1 %984, %v397_v24   ;;  %v833_v51 = vld [vmem:[%s1342_s15 + $0x10] sm:$0xff]  ;;  %v868_v52 = vld [vmem:[#allocation2] sm:$0x1] }
  0x1f   :  { %402 = vperm.xlu0 %983, %v396_v25   ;;  %v392_v53 = vld [vmem:[%s1334_s7] sm:$0xff] }
  0x20   :  { %961 = vmatprep.mubr.msk.f32.mxu0 %vm420_vm3, %v392_v53 }
  0x22   :  { %417 = vperm.xlu1 %984, %v399_v26  }
  0x23   :  { %412 = vperm.xlu0 %983, %v398_v27  }
  0x26   :  { %572 = vperm.xlu1 %984, %v520_v28  }
  0x27   :  { %577 = vperm.xlu0 %983, %v521_v29  }
  0x2a   :  { %567 = vperm.xlu1 %984, %v519_v30  }
  0x2b   :  { %601 = vperm.xlu0 %983, %v525_v31  }
  0x2e   :  { %562 = vperm.xlu1 %984, %v518_v32  }
  0x2f   :  { %596 = vperm.xlu0 %983, %v524_v33  }
  0x32   :  { %586 = vperm.xlu1 %984, %v522_v34  }
  0x33   :  { %591 = vperm.xlu0 %983, %v523_v35  }
  0x36   :  { %627 = vperm.xlu1 %984, %v617_v36  }
  0x37   :  { %622 = vperm.xlu0 %983, %v616_v37  }
  0x3a   :  { %637 = vperm.xlu1 %984, %v619_v38  }
  0x3b   :  { %632 = vperm.xlu0 %983, %v618_v39  }
  0x3e   :  { %786 = vperm.xlu1 %984, %v738_v40  }
  0x3f   :  { %781 = vperm.xlu0 %983, %v737_v41  }
  0x42   :  { %805 = vperm.xlu1 %984, %v741_v42  }
  0x43   :  { %791 = vperm.xlu0 %983, %v739_v43  }
  0x46   :  { %796 = vperm.xlu1 %984, %v740_v44  }
  0x47   :  { %810 = vperm.xlu0 %983, %v742_v45  }
  0x4a   :  { %820 = vperm.xlu1 %984, %v744_v46  }
  0x4b   :  { %815 = vperm.xlu0 %983, %v743_v47  }
  0x4e   :  { %842 = vperm.xlu1 %984, %v832_v48  }
  0x4f   :  { %837 = vperm.xlu0 %983, %v831_v49  }
  0x52   :  { %852 = vperm.xlu1 %984, %v834_v50  }
  0x53   :  { %847 = vperm.xlu0 %983, %v833_v51  }
  0x57   :  { %871 = vperm.xlu0 %983, %v868_v52  }
  0x80   :  { %v276_v54 = vpop.permute.xlu0 %275  ;;  %v286_v59 = vpop.permute.xlu1 %285 }
  0x84   :  { %v281_v0 = vpop.permute.xlu0 %280  ;;  %v291_v9 = vpop.permute.xlu1 %290 }
  0x89   :  { %v353_v40 = vpop.permute.xlu1 %352 }
  0x8a   :  { %v358_v39 = vpop.permute.xlu0 %357 }
  0x8d   :  { %v348_v42 = vpop.permute.xlu1 %347 }
  0x8e   :  { %v382_v41 = vpop.permute.xlu0 %381 }
  0x91   :  { %v343_v51 = vpop.permute.xlu1 %342 }
  0x92   :  { %v377_v47 = vpop.permute.xlu0 %376 }
  0xcc   :  { %v941_v55 = vpop.f32.mrf.mxu0 }
  0xcd   :  { %v949_v56 = vpop.f32.mrf.mxu1 }
  0xce   :  { %v152_v57 = vpop.f32.mrf.mxu0  ;;  %v256_v60 = vadd.f32 %v949_v56, %v941_v55  ;;  %v372_v56 = vpop.permute.xlu0 %371 }
  0xcf   :  { %v250_v58 = vpop.f32.mrf.mxu1 }
  0xd0   :  { %v251_v61 = vadd.f32 %v250_v58, %v152_v57  ;;  %v944_v62 = vpop.f32.mrf.mxu0  ;;  %v294_v4 = vadd.f32 %v281_v0, %v256_v60  ;;  %v367_v58 = vpop.permute.xlu1 %366  ;;  %v393_v0 = vld [vmem:[%s1334_s7 + $0x8] sm:$0xff] }
  0xd1   :  { %v952_v63 = vpop.f32.mrf.mxu1 }
  0xd2   :  { %v293_v1 = vadd.f32 %v276_v54, %v251_v61  ;;  %v162_v2 = vpop.f32.mrf.mxu0  ;;  %v266_v5 = vadd.f32 %v952_v63, %v944_v62 }
  0xd3   :  { %v260_v3 = vpop.f32.mrf.mxu1 }
  0xd4   :  { %v261_v6 = vadd.f32 %v260_v3, %v162_v2  ;;  %v305_v7 = vadd.f32 %v294_v4, %v293_v1  ;;  %v296_v10 = vadd.f32 %v291_v9, %v266_v5  ;;  %v395_v2 = vld [vmem:[%s1334_s7 + $0x18] sm:$0xff]  ;;  %v612_v3 = vld [vmem:[%s1338_s11] sm:$0xff] }
  0xd5   :  { %975 = vmatprep.mubr.msk.f32.mxu1 %vm420_vm3, %v612_v3 }
  0xd6   :  { %v295_v8 = vadd.f32 %v286_v59, %v261_v6  ;;  %v408_v6 = vpop.permute.xlu1 %407 }
  0xd8   :  { %v306_v11 = vadd.f32 %v305_v7, %v295_v8 }
  0xda   :  { %v307_v12 = vadd.f32 %v306_v11, %v296_v10 }
  0xdc   :  { %v308_v13 = vrot.slane %v307_v12, 4 }
  0xde   :  { %v309_v14 = vadd.f32 %v308_v13, %v307_v12 }
  0xe0   :  { %v310_v15 = vrot.slane %v309_v14, 2 }
  0xe2   :  { %v311_v16 = vadd.f32 %v310_v15, %v309_v14  ;;  %v418_v15 = vpop.permute.xlu1 %417 }
  0xe4   :  { %v312_v17 = vrot.slane %v311_v16, 1 }
  0xe6   :  { %v313_v18 = vadd.f32 %v312_v17, %v311_v16 }
  0xe8   :  { %v315_v19 = vmul.f32 0.03125, %v313_v18 }
  0xea   :  { %v316_v20 = vsub.f32 %v293_v1, %v315_v19  ;;  %v317_v21 = vsub.f32 %v294_v4, %v315_v19  ;;  %v318_v22 = vsub.f32 %v295_v8, %v315_v19  ;;  %v319_v23 = vsub.f32 %v296_v10, %v315_v19  ;;  %v394_v1 = vld [vmem:[%s1334_s7 + $0x10] sm:$0xff]  ;;  %v403_v4 = vpop.permute.xlu0 %402 }
  0xec   :  { %v320_v24 = vmul.f32 %v316_v20, %v316_v20  ;;  %v321_v25 = vmul.f32 %v317_v21, %v317_v21  ;;  %v322_v26 = vmul.f32 %v318_v22, %v318_v22  ;;  %v323_v28 = vmul.f32 %v319_v23, %v319_v23 }
  0xee   :  { %v324_v27 = vadd.f32 %v321_v25, %v320_v24  ;;  %v413_v11 = vpop.permute.xlu0 %412 }
  0xf0   :  { %v325_v29 = vadd.f32 %v324_v27, %v322_v26 }
  0xf2   :  { %v326_v30 = vadd.f32 %v325_v29, %v323_v28 }
  0xf4   :  { %v327_v31 = vrot.slane %v326_v30, 4 }
  0xf6   :  { %v328_v32 = vadd.f32 %v327_v31, %v326_v30 }
  0xf8   :  { %v329_v33 = vrot.slane %v328_v32, 2 }
  0xfa   :  { %v330_v34 = vadd.f32 %v329_v33, %v328_v32 }
  0xfc   :  { %v331_v35 = vrot.slane %v330_v34, 1 }
  0xfe   :  { %v332_v36 = vadd.f32 %v331_v35, %v330_v34 }
 0x100   :  { %v333_v37 = vmul.f32 0.03125, %v332_v36 }
 0x102   :  { %v334_v38 = vadd.f32 1e-05, %v333_v37 }
 0x104   :  { %985 = vrsqrt.f32 %v334_v38 }
 0x111   :  { %v986_v43 = vpop.eup %985 }
 0x112   :  { %v338_v44 = vmul.f32 %v986_v43, %v318_v22  ;;  %v339_v45 = vmul.f32 %v986_v43, %v319_v23  ;;  %v337_v46 = vmul.f32 %v986_v43, %v317_v21  ;;  %v336_v49 = vmul.f32 %v986_v43, %v316_v20 }
 0x114   :  { %v363_v48 = vmul.f32 %v358_v39, %v339_v45  ;;  %v362_v50 = vmul.f32 %v353_v40, %v338_v44  ;;  %v361_v52 = vmul.f32 %v348_v42, %v337_v46  ;;  %v360_v54 = vmul.f32 %v343_v51, %v336_v49  ;;  %v578_v45 = vpop.permute.xlu0 %577  ;;  %v573_v46 = vpop.permute.xlu1 %572 }
 0x116   :  { %v387_v53 = vadd.f32 %v382_v41, %v363_v48  ;;  %v386_v55 = vadd.f32 %v377_v47, %v362_v50  ;;  %v385_v57 = vadd.f32 %v372_v56, %v361_v52  ;;  %v384_v59 = vadd.f32 %v367_v58, %v360_v54 }
 0x118   :  { %987 = vtanh.f32 %v387_v53  ;;  %v602_v47 = vpop.permute.xlu0 %601  ;;  %v568_v48 = vpop.permute.xlu1 %567 }
 0x119   :  { %989 = vtanh.f32 %v386_v55 }
 0x11a   :  { %991 = vtanh.f32 %v385_v57 }
 0x11b   :  { %993 = vtanh.f32 %v384_v59 }
 0x11c   :  { %v597_v53 = vpop.permute.xlu0 %596  ;;  %v563_v57 = vpop.permute.xlu1 %562 }
 0x125   :  { %v988_v60 = vpop.eup %987 }
 0x126   :  { %953 = vmatprep.subr.mxu0 %v988_v60  ;;  %v990_v61 = vpop.eup %989 }
 0x127   :  { %954 = vmatpush3.msra.mxu0 %v988_v60  ;;  %v992_v62 = vpop.eup %991 }
 0x128   :  { %955 = vmatprep.subr.mxu0 %v990_v61  ;;  %v994_v63 = vpop.eup %993 }
 0x129   :  { %956 = vmatpush3.msra.mxu0 %v990_v61 }
 0x12a   :  { %957 = vmatprep.subr.mxu0 %v992_v62 }
 0x12b   :  { %958 = vmatpush3.msra.mxu0 %v992_v62  ;;  %v592_v62 = vpop.permute.xlu0 %591 }
 0x12c   :  { %959 = vmatprep.subr.mxu0 %v994_v63 }
 0x12d   :  { %960 = vmatpush3.msra.mxu0 %v994_v63 }
 0x12e   :  { %962 = vmatmul.mubr.msk.f32.vlgmr.msra.gmra.mxu0 %vm420_vm3, %v393_v0  ;;  %v587_v0 = vpop.permute.xlu1 %586 }
 0x12f   :  { %964 = vmatprep.mubr.msk.f32.mxu0 %vm420_vm3, %v394_v1 }
 0x132   :  { %965 = vmatmul.mubr.msk.f32.gmra.mxu0 %vm420_vm3, %v395_v2 }
 0x1ee   :  { %v963_v5 = vpop.f32.mrf.mxu0 }
 0x1ef   :  { %v505_v10 = vadd.f32 %v963_v5, %v408_v6  ;;  %v613_v6 = vld [vmem:[%s1338_s11 + $0x8] sm:$0xff] }
 0x1f0   :  { %v499_v7 = vpop.f32.mrf.mxu0 }
 0x1f1   :  { %v500_v8 = vadd.f32 %v499_v7, %v403_v4  ;;  %v614_v7 = vld [vmem:[%s1338_s11 + $0x10] sm:$0xff] }
 0x1f2   :  { %v966_v9 = vpop.f32.mrf.mxu0 }
 0x1f3   :  { %v526_v13 = vadd.f32 %v505_v10, %v500_v8  ;;  %v515_v16 = vadd.f32 %v966_v9, %v418_v15  ;;  %v623_v9 = vpop.permute.xlu0 %622 }
 0x1f4   :  { %v509_v12 = vpop.f32.mrf.mxu0 }
 0x1f5   :  { %v510_v14 = vadd.f32 %v509_v12, %v413_v11  ;;  %v628_v11 = vpop.permute.xlu1 %627 }
 0x1f7   :  { %v527_v17 = vadd.f32 %v526_v13, %v510_v14 }
 0x1f9   :  { %v528_v18 = vadd.f32 %v527_v17, %v515_v16 }
 0x1fb   :  { %v529_v19 = vrot.slane %v528_v18, 4 }
 0x1fd   :  { %v530_v20 = vadd.f32 %v529_v19, %v528_v18 }
 0x1ff   :  { %v531_v21 = vrot.slane %v530_v20, 2 }
 0x201   :  { %v532_v22 = vadd.f32 %v531_v21, %v530_v20  ;;  %v638_v20 = vpop.permute.xlu1 %637 }
 0x203   :  { %v533_v23 = vrot.slane %v532_v22, 1 }
 0x205   :  { %v534_v24 = vadd.f32 %v533_v23, %v532_v22 }
 0x207   :  { %v535_v25 = vmul.f32 0.03125, %v534_v24 }
 0x209   :  { %v536_v26 = vsub.f32 %v500_v8, %v535_v25  ;;  %v537_v27 = vsub.f32 %v505_v10, %v535_v25  ;;  %v538_v28 = vsub.f32 %v510_v14, %v535_v25  ;;  %v539_v29 = vsub.f32 %v515_v16, %v535_v25  ;;  %v615_v8 = vld [vmem:[%s1338_s11 + $0x18] sm:$0xff]  ;;  %v633_v16 = vpop.permute.xlu0 %632  ;;  %s1038_s11 = smov [#allocation3]  }
 0x20a   :  { %s886_s19 = sshll.u32 %s1038_s11, 4  ;;  %s887_s19 = int_to_ptr.vmem [resolvable:$true] %s886_s19 }
 0x20b   :  { %v540_v30 = vmul.f32 %v536_v26, %v536_v26  ;;  %v541_v31 = vmul.f32 %v537_v27, %v537_v27  ;;  %v542_v32 = vmul.f32 %v538_v28, %v538_v28  ;;  %v543_v34 = vmul.f32 %v539_v29, %v539_v29  ;;  %s1015_s1 = scalar_lea.vmem %s887_s19, 16  ;;  %s1019_s20 = scalar_lea.vmem %s887_s19, 32 }
 0x20c   :  { %p1016_p0 = scmp.ne.s32.totalorder %s887_s19, %s1015_s1  ;;  %p1020_p1 = scmp.lt.s32.totalorder %s887_s19, %s887_s19 }
 0x20d   :  { %v544_v33 = vadd.f32 %v541_v31, %v540_v30  ;;  %p1021_p2 = scmp.lt.s32.totalorder %s1019_s20, %s1015_s1 }
 0x20f   :  { %v545_v35 = vadd.f32 %v544_v33, %v542_v32  ;;  %p1022_p3 = por %p1021_p2, %p1020_p1 }
 0x211   :  { %v546_v36 = vadd.f32 %v545_v35, %v543_v34  ;;  %p1023_p4 = pnand %p1022_p3, %p1016_p0 }
 0x213   :  { %v547_v37 = vrot.slane %v546_v36, 4 }
 0x215   :  { %v548_v38 = vadd.f32 %v547_v37, %v546_v36 }
 0x217   :  { %v549_v39 = vrot.slane %v548_v38, 2 }
 0x219   :  { %v550_v40 = vadd.f32 %v549_v39, %v548_v38 }
 0x21b   :  { %v551_v41 = vrot.slane %v550_v40, 1 }
 0x21d   :  { %v552_v42 = vadd.f32 %v551_v41, %v550_v40 }
 0x21f   :  { %v553_v43 = vmul.f32 0.03125, %v552_v42 }
 0x221   :  { %v554_v44 = vadd.f32 1e-05, %v553_v43 }
 0x223   :  { %995 = vrsqrt.f32 %v554_v44 }
 0x230   :  { %v996_v49 = vpop.eup %995 }
 0x231   :  { %v558_v50 = vmul.f32 %v996_v49, %v538_v28  ;;  %v559_v51 = vmul.f32 %v996_v49, %v539_v29  ;;  %v557_v52 = vmul.f32 %v996_v49, %v537_v27  ;;  %v556_v55 = vmul.f32 %v996_v49, %v536_v26 }
 0x233   :  { %v583_v54 = vmul.f32 %v578_v45, %v559_v51  ;;  %v582_v56 = vmul.f32 %v573_v46, %v558_v50  ;;  %v581_v58 = vmul.f32 %v568_v48, %v557_v52  ;;  %v580_v60 = vmul.f32 %v563_v57, %v556_v55  ;;  %v782_v50 = vpop.permute.xlu0 %781  ;;  %v787_v51 = vpop.permute.xlu1 %786 }
 0x235   :  { %v607_v59 = vadd.f32 %v602_v47, %v583_v54  ;;  %v606_v61 = vadd.f32 %v597_v53, %v582_v56  ;;  %v605_v63 = vadd.f32 %v592_v62, %v581_v58  ;;  %v604_v1 = vadd.f32 %v587_v0, %v580_v60 }
 0x237   :  { %997 = vtanh.f32 %v607_v59  ;;  %v792_v52 = vpop.permute.xlu0 %791  ;;  %v806_v53 = vpop.permute.xlu1 %805 }
 0x238   :  { %999 = vtanh.f32 %v606_v61 }
 0x239   :  { %1001 = vtanh.f32 %v605_v63 }
 0x23a   :  { %1003 = vtanh.f32 %v604_v1 }
 0x23b   :  { %v811_v54 = vpop.permute.xlu0 %810  ;;  %v797_v55 = vpop.permute.xlu1 %796 }
 0x23f   :  { %v816_v1 = vpop.permute.xlu0 %815 }
 0x244   :  { %v998_v2 = vpop.eup %997 }
 0x245   :  { %967 = vmatprep.subr.mxu1 %v998_v2  ;;  %v1000_v3 = vpop.eup %999 }
 0x246   :  { %968 = vmatpush3.msra.mxu1 %v998_v2  ;;  %v1002_v4 = vpop.eup %1001  ;;  %v821_v2 = vpop.permute.xlu1 %820 }
 0x247   :  { %969 = vmatprep.subr.mxu1 %v1000_v3  ;;  %v1004_v5 = vpop.eup %1003 }
 0x248   :  { %970 = vmatpush3.msra.mxu1 %v1000_v3 }
 0x249   :  { %971 = vmatprep.subr.mxu1 %v1002_v4 }
 0x24a   :  { %972 = vmatpush3.msra.mxu1 %v1002_v4 }
 0x24b   :  { %973 = vmatprep.subr.mxu1 %v1004_v5 }
 0x24c   :  { %974 = vmatpush3.msra.mxu1 %v1004_v5 }
 0x24d   :  { %976 = vmatmul.mubr.msk.f32.vlgmr.msra.gmra.mxu1 %vm420_vm3, %v613_v6 }
 0x24e   :  { %978 = vmatprep.mubr.msk.f32.mxu1 %vm420_vm3, %v614_v7  ;;  %v838_v7 = vpop.permute.xlu0 %837 }
 0x251   :  { %979 = vmatmul.mubr.msk.f32.gmra.mxu1 %vm420_vm3, %v615_v8  ;;  %v843_v8 = vpop.permute.xlu1 %842 }
 0x30d   :  { %v977_v10 = vpop.f32.mrf.mxu1 }
 0x30e   :  { %v724_v15 = vadd.f32 %v977_v10, %v628_v11 }
 0x30f   :  { %v718_v12 = vpop.f32.mrf.mxu1 }
 0x310   :  { %v719_v13 = vadd.f32 %v718_v12, %v623_v9 }
 0x311   :  { %v980_v14 = vpop.f32.mrf.mxu1 }
 0x312   :  { %v745_v18 = vadd.f32 %v724_v15, %v719_v13  ;;  %v734_v21 = vadd.f32 %v980_v14, %v638_v20 }
 0x313   :  { %v728_v17 = vpop.f32.mrf.mxu1 }
 0x314   :  { %v729_v19 = vadd.f32 %v728_v17, %v633_v16 }
 0x316   :  { %v746_v22 = vadd.f32 %v745_v18, %v729_v19  ;;  %v853_v18 = vpop.permute.xlu1 %852 }
 0x318   :  { %v747_v23 = vadd.f32 %v746_v22, %v734_v21 }
 0x31a   :  { %v748_v24 = vrot.slane %v747_v23, 4 }
 0x31c   :  { %v749_v25 = vadd.f32 %v748_v24, %v747_v23 }
 0x31e   :  { %v750_v26 = vrot.slane %v749_v25, 2 }
 0x320   :  { %v751_v27 = vadd.f32 %v750_v26, %v749_v25 }
 0x322   :  { %v752_v28 = vrot.slane %v751_v27, 1 }
 0x324   :  { %v753_v29 = vadd.f32 %v752_v28, %v751_v27 }
 0x326   :  { %v754_v30 = vmul.f32 0.03125, %v753_v29 }
 0x328   :  { %v755_v31 = vsub.f32 %v719_v13, %v754_v30  ;;  %v756_v32 = vsub.f32 %v724_v15, %v754_v30  ;;  %v757_v33 = vsub.f32 %v729_v19, %v754_v30  ;;  %v758_v34 = vsub.f32 %v734_v21, %v754_v30  ;;  %v848_v15 = vpop.permute.xlu0 %847 }
 0x329   :  { %v874_v21 = vlaneseq }
 0x32a   :  { %v759_v35 = vmul.f32 %v755_v31, %v755_v31  ;;  %v760_v36 = vmul.f32 %v756_v32, %v756_v32  ;;  %v761_v37 = vmul.f32 %v757_v33, %v757_v33  ;;  %v762_v39 = vmul.f32 %v758_v34, %v758_v34 }
 0x32b   :  { %v875_v24 = vshrl.u32 %v874_v21, 7 }
 0x32c   :  { %v763_v38 = vadd.f32 %v760_v36, %v759_v35  ;;  %v872_v29 = vpop.permute.xlu0 %871 }
 0x32d   :  { %v876_v27 = vsub.s32 0, %v875_v24 }
 0x32e   :  { %v764_v40 = vadd.f32 %v763_v38, %v761_v37 }
 0x330   :  { %v765_v41 = vadd.f32 %v764_v40, %v762_v39 }
 0x332   :  { %v766_v42 = vrot.slane %v765_v41, 4 }
 0x334   :  { %v767_v43 = vadd.f32 %v766_v42, %v765_v41 }
 0x336   :  { %v768_v44 = vrot.slane %v767_v43, 2 }
 0x338   :  { %v769_v45 = vadd.f32 %v768_v44, %v767_v43 }
 0x33a   :  { %v770_v46 = vrot.slane %v769_v45, 1 }
 0x33c   :  { %v771_v47 = vadd.f32 %v770_v46, %v769_v45 }
 0x33e   :  { %v772_v48 = vmul.f32 0.03125, %v771_v47 }
 0x340   :  { %v773_v49 = vadd.f32 1e-05, %v772_v48 }
 0x342   :  { %1005 = vrsqrt.f32 %v773_v49 }
 0x34f   :  { %v1006_v56 = vpop.eup %1005 }
 0x350   :  { %v775_v57 = vmul.f32 %v1006_v56, %v755_v31  ;;  %v776_v58 = vmul.f32 %v1006_v56, %v756_v32  ;;  %v777_v59 = vmul.f32 %v1006_v56, %v757_v33  ;;  %v778_v60 = vmul.f32 %v1006_v56, %v758_v34 }
 0x351   :  { %v877_v31 = vrot.slane %v872_v29, %v876_v27 }
 0x352   :  { %v799_v61 = vmul.f32 %v782_v50, %v775_v57  ;;  %v800_v62 = vmul.f32 %v787_v51, %v776_v58  ;;  %v801_v63 = vmul.f32 %v792_v52, %v777_v59  ;;  %v802_v0 = vmul.f32 %v797_v55, %v778_v60 }
 0x354   :  { %v823_v3 = vadd.f32 %v806_v53, %v799_v61  ;;  %v824_v4 = vadd.f32 %v811_v54, %v800_v62  ;;  %v825_v5 = vadd.f32 %v816_v1, %v801_v63  ;;  %v826_v6 = vadd.f32 %v821_v2, %v802_v0 }
 0x356   :  { %1007 = vtanh.f32 %v823_v3 }
 0x357   :  { %1009 = vtanh.f32 %v824_v4 }
 0x358   :  { %1011 = vtanh.f32 %v825_v5 }
 0x359   :  { %1013 = vtanh.f32 %v826_v6 }
 0x363   :  { %v1008_v9 = vpop.eup %1007 }
 0x364   :  { %v1010_v10 = vpop.eup %1009  ;;  %v855_v11 = vmul.f32 %v1008_v9, %v838_v7 }
 0x365   :  { %v1012_v12 = vpop.eup %1011  ;;  %v856_v13 = vmul.f32 %v1010_v10, %v843_v8 }
 0x366   :  { %v1014_v14 = vpop.eup %1013  ;;  %v857_v16 = vmul.f32 %v1012_v12, %v848_v15 }
 0x367   :  { %v859_v17 = vadd.f32 %v856_v13, %v855_v11  ;;  %v858_v19 = vmul.f32 %v1014_v14, %v853_v18 }
 0x369   :  { %v860_v20 = vadd.f32 %v859_v17, %v857_v16 }
 0x36b   :  { %v861_v22 = vadd.f32 %v860_v20, %v858_v19 }
 0x36d   :  { %v862_v23 = vrot.slane %v861_v22, 4 }
 0x36f   :  { %v863_v25 = vadd.f32 %v862_v23, %v861_v22 }
 0x371   :  { %v864_v26 = vrot.slane %v863_v25, 2 }
 0x373   :  { %v865_v28 = vadd.f32 %v864_v26, %v863_v25 }
 0x375   :  { %v866_v30 = vrot.slane %v865_v28, 1 }
 0x377   :  { %v867_v32 = vadd.f32 %v866_v30, %v865_v28 }
 0x379   :  { %v878_v33 = vadd.f32 %v877_v31, %v867_v32 }
 0x37b   :  { %879 = vst [vmem:[#allocation3] sm:$0x1] %v878_v33 }
 0x37c   :  { %1026 = shalt.err (!%p1023_p4)
}
 0x37d   :  { %889 = dma.vmem_to_hbm [thread:$0]  %s887_s19, 16, %s1344_s17, [#allocation4]  }
 0x37e   :  { %1035 = dma.done.wait [#allocation4], 16  }
 0x37f   :  { %1036 = vsyncadd [#allocation4], 4294967280 }
 0x380   :  { %893 = vsyncpa [#allocation4], 1 }

// kernel: tpu_custom_call.1
= control target key start
LH: loop header
LB: loop body
LE: loop exit
PB: predicated region body
PF: predicated region fallthrough
CT: control target
= control target key end

     0   :  { %s1327_s0 = inlined_call_operand.vmem [shape: f32[8,128], index: 0, kind: input, shape index: {}]   ;;  %s1328_s1 = inlined_call_operand.vmem [shape: f32[4,128], index: 1, kind: input, shape index: {}]   ;;  %s1329_s2 = inlined_call_operand.vmem [shape: f32[32,8], index: 2, kind: input, shape index: {}]   ;;  %s1330_s3 = inlined_call_operand.vmem [shape: f32[32,4], index: 3, kind: input, shape index: {}]   ;;  %s1331_s4 = inlined_call_operand.vmem [shape: f32[32,1], index: 4, kind: input, shape index: {}]   ;;  %s1332_s5 = inlined_call_operand.vmem [shape: f32[32,1], index: 5, kind: input, shape index: {}]   ;;  %s1333_s6 = inlined_call_operand.vmem [shape: f32[32,1], index: 6, kind: input, shape index: {}]   ;;  %s1334_s7 = inlined_call_operand.vmem [shape: f32[32,32], index: 7, kind: input, shape index: {}]   ;;  %s1335_s8 = inlined_call_operand.vmem [shape: f32[32,1], index: 8, kind: input, shape index: {}]   ;;  %s1336_s9 = inlined_call_operand.vmem [shape: f32[32,1], index: 9, kind: input, shape index: {}]   ;;  %s1337_s10 = inlined_call_operand.vmem [shape: f32[32,1], index: 10, kind: input, shape index: {}]   ;;  %s1338_s11 = inlined_call_operand.vmem [shape: f32[32,32], index: 11, kind: input, shape index: {}]   ;;  %s1339_s12 = inlined_call_operand.vmem [shape: f32[32,1], index: 12, kind: input, shape index: {}]   ;;  %s1340_s13 = inlined_call_operand.vmem [shape: f32[32,1], index: 13, kind: input, shape index: {}]   ;;  %s1341_s14 = inlined_call_operand.vmem [shape: f32[32,1], index: 14, kind: input, shape index: {}]   ;;  %s1342_s15 = inlined_call_operand.vmem [shape: f32[32,1], index: 15, kind: input, shape index: {}]   ;;  %s1343_s16 = inlined_call_operand.<no memory space> [shape: f32[1,1], index: 16, kind: input, shape index: {}]   ;;  %s1344_s17 = inlined_call_operand.hbm [shape: f32[1,128], index: 17, kind: output, shape index: {}]  }
   0x1   :  { %1345 = sst [smem:[#allocation6_spill]] %s1327_s0  ;;  %v22_v0 = vstv %s1343_s16 }
   0x2   :  { %1346 = sst [smem:[#allocation7_spill]] %s1328_s1  ;;  %23 = vst [vmem:[#allocation2] sm:$0x1] %v22_v0 }
   0x3   :  { %s1347_s28 = sld [smem:[#allocation7_spill]]  ;;  %vm82_vm0 = vcmask 1043456   ;;  %v271_v3 = vld [vmem:[%s1331_s4 + $0x10] sm:$0xff]  ;;  %v1037_v4 = vmov 0   ;;  %v269_v5 = vld [vmem:[%s1331_s4] sm:$0xff]  ;;  %vm69_vm1 = vcmask 31744  }
   0x4   :  { %s1348_s30 = sld [smem:[#allocation6_spill]]  ;;  %984 = vset.pattern.permute.xlu1 %v1037_v4  ;;  %983 = vset.pattern.permute.xlu0 %v1037_v4  ;;  %v64_v6 = vld [vmem:[%s1330_s3] sm:$0xff]  ;;  %vm171_vm2 = vcmask 64512   ;;  %v65_v8 = vld [vmem:[%s1330_s3 + $0x8] sm:$0xff]  ;;  %v272_v10 = vld [vmem:[%s1331_s4 + $0x18] sm:$0xff] }
   0x5   :  { %v59_v7 = vld [vmem:[%s1329_s2] sm:$0xff]  ;;  %285 = vperm.xlu1 %984, %v271_v3   ;;  %275 = vperm.xlu0 %983, %v269_v5   ;;  %v60_v9 = vld [vmem:[%s1329_s2 + $0x8] sm:$0xff]  ;;  %v66_v12 = vld [vmem:[%s1330_s3 + $0x10] sm:$0xff] }
   0x6   :  { %939 = vmatprep.mubr.msk.f32.mxu0 %vm69_vm1, %v64_v6  ;;  %v270_v11 = vld [vmem:[%s1331_s4 + $0x8] sm:$0xff]  ;;  %947 = vmatprep.mubr.msk.f32.mxu1 %vm171_vm2, %v59_v7  ;;  %v61_v13 = vld [vmem:[%s1329_s2 + $0x10] sm:$0xff]  ;;  %v67_v14 = vld [vmem:[%s1330_s3 + $0x18] sm:$0xff] }
   0x7   :  { %v62_v15 = vld [vmem:[%s1329_s2 + $0x18] sm:$0xff]  ;;  %v299_v16 = vld [vmem:[%s1332_s5 + $0x10] sm:$0xff]  ;;  %v298_v18 = vld [vmem:[%s1332_s5 + $0x8] sm:$0xff] }
   0x8   :  { %v300_v17 = vld [vmem:[%s1332_s5 + $0x18] sm:$0xff]  ;;  %v297_v20 = vld [vmem:[%s1332_s5] sm:$0xff]  ;;  %v303_v21 = vld [vmem:[%s1333_s6 + $0x10] sm:$0xff] }
   0x9   :  { %v68_v1 = vld [vmem:[%s1347_s28] sm:$0xf]  ;;  %290 = vperm.xlu1 %984, %v272_v10   ;;  %280 = vperm.xlu0 %983, %v270_v11   ;;  %v304_v19 = vld [vmem:[%s1333_s6 + $0x18] sm:$0xff] }
   0xa   :  { %v63_v2 = vld [vmem:[%s1348_s30] sm:$0xff]  ;;  %937 = vmatprep.subr.msk.mxu0 %vm82_vm0, %v68_v1 }
   0xb   :  { %945 = vmatprep.subr.mxu1 %v63_v2  ;;  %938 = vmatpush3.msk.msra.mxu0 %vm82_vm0, %v68_v1 }
   0xc   :  { %946 = vmatpush3.msra.mxu1 %v63_v2  ;;  %940 = vmatmul.mubr.msk.f32.vlgmr.msra.gmra.mxu0 %vm69_vm1, %v65_v8 }
   0xd   :  { %948 = vmatmul.mubr.msk.f32.vlgmr.msra.gmra.mxu1 %vm171_vm2, %v60_v9  ;;  %942 = vmatprep.mubr.msk.f32.mxu0 %vm69_vm1, %v66_v12 }
   0xe   :  { %950 = vmatprep.mubr.msk.f32.mxu1 %vm171_vm2, %v61_v13  ;;  %352 = vperm.xlu1 %984, %v299_v16  }
   0xf   :  { %357 = vperm.xlu0 %983, %v300_v17  }
  0x10   :  { %943 = vmatmul.mubr.msk.f32.gmra.mxu0 %vm69_vm1, %v67_v14 }
  0x11   :  { %951 = vmatmul.mubr.msk.f32.gmra.mxu1 %vm171_vm2, %v62_v15 }
  0x12   :  { %347 = vperm.xlu1 %984, %v298_v18  }
  0x13   :  { %381 = vperm.xlu0 %983, %v304_v19  }
  0x14   :  { %24 = vsyncpa [#allocation4], 0  ;;  %v301_v22 = vld [vmem:[%s1333_s6] sm:$0xff]  ;;  %v302_v23 = vld [vmem:[%s1333_s6 + $0x8] sm:$0xff]  ;;  %vm420_vm3 = vcmask 261120  }
  0x15   :  { %v397_v24 = vld [vmem:[%s1335_s8 + $0x8] sm:$0xff]  ;;  %v396_v25 = vld [vmem:[%s1335_s8] sm:$0xff]  ;;  %v399_v26 = vld [vmem:[%s1335_s8 + $0x18] sm:$0xff] }
  0x16   :  { %342 = vperm.xlu1 %984, %v297_v20   ;;  %v398_v27 = vld [vmem:[%s1335_s8 + $0x10] sm:$0xff]  ;;  %v521_v29 = vld [vmem:[%s1336_s9 + $0x18] sm:$0xff]  ;;  %v519_v30 = vld [vmem:[%s1336_s9 + $0x8] sm:$0xff] }
  0x17   :  { %376 = vperm.xlu0 %983, %v303_v21   ;;  %v520_v28 = vld [vmem:[%s1336_s9 + $0x10] sm:$0xff]  ;;  %v525_v31 = vld [vmem:[%s1337_s10 + $0x18] sm:$0xff]  ;;  %v518_v32 = vld [vmem:[%s1336_s9] sm:$0xff] }
  0x18   :  { %v524_v33 = vld [vmem:[%s1337_s10 + $0x10] sm:$0xff]  ;;  %v522_v34 = vld [vmem:[%s1337_s10] sm:$0xff]  ;;  %v523_v35 = vld [vmem:[%s1337_s10 + $0x8] sm:$0xff] }
  0x19   :  { %v617_v36 = vld [vmem:[%s1339_s12 + $0x8] sm:$0xff]  ;;  %v616_v37 = vld [vmem:[%s1339_s12] sm:$0xff]  ;;  %v619_v38 = vld [vmem:[%s1339_s12 + $0x18] sm:$0xff] }
  0x1a   :  { %366 = vperm.xlu1 %984, %v301_v22   ;;  %v618_v39 = vld [vmem:[%s1339_s12 + $0x10] sm:$0xff]  ;;  %v738_v40 = vld [vmem:[%s1340_s13 + $0x8] sm:$0xff]  ;;  %v737_v41 = vld [vmem:[%s1340_s13] sm:$0xff] }
  0x1b   :  { %371 = vperm.xlu0 %983, %v302_v23   ;;  %v741_v42 = vld [vmem:[%s1341_s14] sm:$0xff]  ;;  %v739_v43 = vld [vmem:[%s1340_s13 + $0x10] sm:$0xff]  ;;  %v740_v44 = vld [vmem:[%s1340_s13 + $0x18] sm:$0xff] }
  0x1c   :  { %v742_v45 = vld [vmem:[%s1341_s14 + $0x8] sm:$0xff]  ;;  %v744_v46 = vld [vmem:[%s1341_s14 + $0x18] sm:$0xff]  ;;  %v743_v47 = vld [vmem:[%s1341_s14 + $0x10] sm:$0xff] }
  0x1d   :  { %v832_v48 = vld [vmem:[%s1342_s15 + $0x8] sm:$0xff]  ;;  %v831_v49 = vld [vmem:[%s1342_s15] sm:$0xff]  ;;  %v834_v50 = vld [vmem:[%s1342_s15 + $0x18] sm:$0xff] }
  0x1e   :  { %407 = vperm.xlu1 %984, %v397_v24   ;;  %v833_v51 = vld [vmem:[%s1342_s15 + $0x10] sm:$0xff]  ;;  %v868_v52 = vld [vmem:[#allocation2] sm:$0x1] }
  0x1f   :  { %402 = vperm.xlu0 %983, %v396_v25   ;;  %v392_v53 = vld [vmem:[%s1334_s7] sm:$0xff] }
  0x20   :  { %961 = vmatprep.mubr.msk.f32.mxu0 %vm420_vm3, %v392_v53 }
  0x22   :  { %417 = vperm.xlu1 %984, %v399_v26  }
  0x23   :  { %412 = vperm.xlu0 %983, %v398_v27  }
  0x26   :  { %572 = vperm.xlu1 %984, %v520_v28  }
  0x27   :  { %577 = vperm.xlu0 %983, %v521_v29  }
  0x2a   :  { %567 = vperm.xlu1 %984, %v519_v30  }
  0x2b   :  { %601 = vperm.xlu0 %983, %v525_v31  }
  0x2e   :  { %562 = vperm.xlu1 %984, %v518_v32  }
  0x2f   :  { %596 = vperm.xlu0 %983, %v524_v33  }
  0x32   :  { %586 = vperm.xlu1 %984, %v522_v34  }
  0x33   :  { %591 = vperm.xlu0 %983, %v523_v35  }
  0x36   :  { %627 = vperm.xlu1 %984, %v617_v36  }
  0x37   :  { %622 = vperm.xlu0 %983, %v616_v37  }
  0x3a   :  { %637 = vperm.xlu1 %984, %v619_v38  }
  0x3b   :  { %632 = vperm.xlu0 %983, %v618_v39  }
  0x3e   :  { %786 = vperm.xlu1 %984, %v738_v40  }
  0x3f   :  { %781 = vperm.xlu0 %983, %v737_v41  }
  0x42   :  { %805 = vperm.xlu1 %984, %v741_v42  }
  0x43   :  { %791 = vperm.xlu0 %983, %v739_v43  }
  0x46   :  { %796 = vperm.xlu1 %984, %v740_v44  }
  0x47   :  { %810 = vperm.xlu0 %983, %v742_v45  }
  0x4a   :  { %820 = vperm.xlu1 %984, %v744_v46  }
  0x4b   :  { %815 = vperm.xlu0 %983, %v743_v47  }
  0x4e   :  { %842 = vperm.xlu1 %984, %v832_v48  }
  0x4f   :  { %837 = vperm.xlu0 %983, %v831_v49  }
  0x52   :  { %852 = vperm.xlu1 %984, %v834_v50  }
  0x53   :  { %847 = vperm.xlu0 %983, %v833_v51  }
  0x57   :  { %871 = vperm.xlu0 %983, %v868_v52  }
  0x80   :  { %v276_v54 = vpop.permute.xlu0 %275  ;;  %v286_v59 = vpop.permute.xlu1 %285 }
  0x84   :  { %v281_v0 = vpop.permute.xlu0 %280  ;;  %v291_v9 = vpop.permute.xlu1 %290 }
  0x89   :  { %v353_v40 = vpop.permute.xlu1 %352 }
  0x8a   :  { %v358_v39 = vpop.permute.xlu0 %357 }
  0x8d   :  { %v348_v42 = vpop.permute.xlu1 %347 }
  0x8e   :  { %v382_v41 = vpop.permute.xlu0 %381 }
  0x91   :  { %v343_v51 = vpop.permute.xlu1 %342 }
  0x92   :  { %v377_v47 = vpop.permute.xlu0 %376 }
  0xcc   :  { %v941_v55 = vpop.f32.mrf.mxu0 }
  0xcd   :  { %v949_v56 = vpop.f32.mrf.mxu1 }
  0xce   :  { %v152_v57 = vpop.f32.mrf.mxu0  ;;  %v256_v60 = vadd.f32 %v949_v56, %v941_v55  ;;  %v372_v56 = vpop.permute.xlu0 %371 }
  0xcf   :  { %v250_v58 = vpop.f32.mrf.mxu1 }
  0xd0   :  { %v251_v61 = vadd.f32 %v250_v58, %v152_v57  ;;  %v944_v62 = vpop.f32.mrf.mxu0  ;;  %v294_v4 = vadd.f32 %v281_v0, %v256_v60  ;;  %v367_v58 = vpop.permute.xlu1 %366  ;;  %v393_v0 = vld [vmem:[%s1334_s7 + $0x8] sm:$0xff] }
  0xd1   :  { %v952_v63 = vpop.f32.mrf.mxu1 }
  0xd2   :  { %v293_v1 = vadd.f32 %v276_v54, %v251_v61  ;;  %v162_v2 = vpop.f32.mrf.mxu0  ;;  %v266_v5 = vadd.f32 %v952_v63, %v944_v62 }
  0xd3   :  { %v260_v3 = vpop.f32.mrf.mxu1 }
  0xd4   :  { %v261_v6 = vadd.f32 %v260_v3, %v162_v2  ;;  %v305_v7 = vadd.f32 %v294_v4, %v293_v1  ;;  %v296_v10 = vadd.f32 %v291_v9, %v266_v5  ;;  %v395_v2 = vld [vmem:[%s1334_s7 + $0x18] sm:$0xff]  ;;  %v612_v3 = vld [vmem:[%s1338_s11] sm:$0xff] }
  0xd5   :  { %975 = vmatprep.mubr.msk.f32.mxu1 %vm420_vm3, %v612_v3 }
  0xd6   :  { %v295_v8 = vadd.f32 %v286_v59, %v261_v6  ;;  %v408_v6 = vpop.permute.xlu1 %407 }
  0xd8   :  { %v306_v11 = vadd.f32 %v305_v7, %v295_v8 }
  0xda   :  { %v307_v12 = vadd.f32 %v306_v11, %v296_v10 }
  0xdc   :  { %v308_v13 = vrot.slane %v307_v12, 4 }
  0xde   :  { %v309_v14 = vadd.f32 %v308_v13, %v307_v12 }
  0xe0   :  { %v310_v15 = vrot.slane %v309_v14, 2 }
  0xe2   :  { %v311_v16 = vadd.f32 %v310_v15, %v309_v14  ;;  %v418_v15 = vpop.permute.xlu1 %417 }
  0xe4   :  { %v312_v17 = vrot.slane %v311_v16, 1 }
  0xe6   :  { %v313_v18 = vadd.f32 %v312_v17, %v311_v16 }
  0xe8   :  { %v315_v19 = vmul.f32 0.03125, %v313_v18 }
  0xea   :  { %v316_v20 = vsub.f32 %v293_v1, %v315_v19  ;;  %v317_v21 = vsub.f32 %v294_v4, %v315_v19  ;;  %v318_v22 = vsub.f32 %v295_v8, %v315_v19  ;;  %v319_v23 = vsub.f32 %v296_v10, %v315_v19  ;;  %v394_v1 = vld [vmem:[%s1334_s7 + $0x10] sm:$0xff]  ;;  %v403_v4 = vpop.permute.xlu0 %402 }
  0xec   :  { %v320_v24 = vmul.f32 %v316_v20, %v316_v20  ;;  %v321_v25 = vmul.f32 %v317_v21, %v317_v21  ;;  %v322_v26 = vmul.f32 %v318_v22, %v318_v22  ;;  %v323_v28 = vmul.f32 %v319_v23, %v319_v23 }
  0xee   :  { %v324_v27 = vadd.f32 %v321_v25, %v320_v24  ;;  %v413_v11 = vpop.permute.xlu0 %412 }
  0xf0   :  { %v325_v29 = vadd.f32 %v324_v27, %v322_v26 }
  0xf2   :  { %v326_v30 = vadd.f32 %v325_v29, %v323_v28 }
  0xf4   :  { %v327_v31 = vrot.slane %v326_v30, 4 }
  0xf6   :  { %v328_v32 = vadd.f32 %v327_v31, %v326_v30 }
  0xf8   :  { %v329_v33 = vrot.slane %v328_v32, 2 }
  0xfa   :  { %v330_v34 = vadd.f32 %v329_v33, %v328_v32 }
  0xfc   :  { %v331_v35 = vrot.slane %v330_v34, 1 }
  0xfe   :  { %v332_v36 = vadd.f32 %v331_v35, %v330_v34 }
 0x100   :  { %v333_v37 = vmul.f32 0.03125, %v332_v36 }
 0x102   :  { %v334_v38 = vadd.f32 1e-05, %v333_v37 }
 0x104   :  { %985 = vrsqrt.f32 %v334_v38 }
 0x111   :  { %v986_v43 = vpop.eup %985 }
 0x112   :  { %v338_v44 = vmul.f32 %v986_v43, %v318_v22  ;;  %v339_v45 = vmul.f32 %v986_v43, %v319_v23  ;;  %v337_v46 = vmul.f32 %v986_v43, %v317_v21  ;;  %v336_v49 = vmul.f32 %v986_v43, %v316_v20 }
 0x114   :  { %v363_v48 = vmul.f32 %v358_v39, %v339_v45  ;;  %v362_v50 = vmul.f32 %v353_v40, %v338_v44  ;;  %v361_v52 = vmul.f32 %v348_v42, %v337_v46  ;;  %v360_v54 = vmul.f32 %v343_v51, %v336_v49  ;;  %v578_v45 = vpop.permute.xlu0 %577  ;;  %v573_v46 = vpop.permute.xlu1 %572 }
 0x116   :  { %v387_v53 = vadd.f32 %v382_v41, %v363_v48  ;;  %v386_v55 = vadd.f32 %v377_v47, %v362_v50  ;;  %v385_v57 = vadd.f32 %v372_v56, %v361_v52  ;;  %v384_v59 = vadd.f32 %v367_v58, %v360_v54 }
 0x118   :  { %987 = vtanh.f32 %v387_v53  ;;  %v602_v47 = vpop.permute.xlu0 %601  ;;  %v568_v48 = vpop.permute.xlu1 %567 }
 0x119   :  { %989 = vtanh.f32 %v386_v55 }
 0x11a   :  { %991 = vtanh.f32 %v385_v57 }
 0x11b   :  { %993 = vtanh.f32 %v384_v59 }
 0x11c   :  { %v597_v53 = vpop.permute.xlu0 %596  ;;  %v563_v57 = vpop.permute.xlu1 %562 }
 0x125   :  { %v988_v60 = vpop.eup %987 }
 0x126   :  { %953 = vmatprep.subr.mxu0 %v988_v60  ;;  %v990_v61 = vpop.eup %989 }
 0x127   :  { %954 = vmatpush3.msra.mxu0 %v988_v60  ;;  %v992_v62 = vpop.eup %991 }
 0x128   :  { %955 = vmatprep.subr.mxu0 %v990_v61  ;;  %v994_v63 = vpop.eup %993 }
 0x129   :  { %956 = vmatpush3.msra.mxu0 %v990_v61 }
 0x12a   :  { %957 = vmatprep.subr.mxu0 %v992_v62 }
 0x12b   :  { %958 = vmatpush3.msra.mxu0 %v992_v62  ;;  %v592_v62 = vpop.permute.xlu0 %591 }
 0x12c   :  { %959 = vmatprep.subr.mxu0 %v994_v63 }
 0x12d   :  { %960 = vmatpush3.msra.mxu0 %v994_v63 }
 0x12e   :  { %962 = vmatmul.mubr.msk.f32.vlgmr.msra.gmra.mxu0 %vm420_vm3, %v393_v0  ;;  %v587_v0 = vpop.permute.xlu1 %586 }
 0x12f   :  { %964 = vmatprep.mubr.msk.f32.mxu0 %vm420_vm3, %v394_v1 }
 0x132   :  { %965 = vmatmul.mubr.msk.f32.gmra.mxu0 %vm420_vm3, %v395_v2 }
 0x1ee   :  { %v963_v5 = vpop.f32.mrf.mxu0 }
 0x1ef   :  { %v505_v10 = vadd.f32 %v963_v5, %v408_v6  ;;  %v613_v6 = vld [vmem:[%s1338_s11 + $0x8] sm:$0xff] }
 0x1f0   :  { %v499_v7 = vpop.f32.mrf.mxu0 }
 0x1f1   :  { %v500_v8 = vadd.f32 %v499_v7, %v403_v4  ;;  %v614_v7 = vld [vmem:[%s1338_s11 + $0x10] sm:$0xff] }
 0x1f2   :  { %v966_v9 = vpop.f32.mrf.mxu0 }
 0x1f3   :  { %v526_v13 = vadd.f32 %v505_v10, %v500_v8  ;;  %v515_v16 = vadd.f32 %v966_v9, %v418_v15  ;;  %v623_v9 = vpop.permute.xlu0 %622 }
 0x1f4   :  { %v509_v12 = vpop.f32.mrf.mxu0 }
 0x1f5   :  { %v510_v14 = vadd.f32 %v509_v12, %v413_v11  ;;  %v628_v11 = vpop.permute.xlu1 %627 }
 0x1f7   :  { %v527_v17 = vadd.f32 %v526_v13, %v510_v14 }
 0x1f9   :  { %v528_v18 = vadd.f32 %v527_v17, %v515_v16 }
 0x1fb   :  { %v529_v19 = vrot.slane %v528_v18, 4 }
 0x1fd   :  { %v530_v20 = vadd.f32 %v529_v19, %v528_v18 }
 0x1ff   :  { %v531_v21 = vrot.slane %v530_v20, 2 }
 0x201   :  { %v532_v22 = vadd.f32 %v531_v21, %v530_v20  ;;  %v638_v20 = vpop.permute.xlu1 %637 }
 0x203   :  { %v533_v23 = vrot.slane %v532_v22, 1 }
 0x205   :  { %v534_v24 = vadd.f32 %v533_v23, %v532_v22 }
 0x207   :  { %v535_v25 = vmul.f32 0.03125, %v534_v24 }
 0x209   :  { %v536_v26 = vsub.f32 %v500_v8, %v535_v25  ;;  %v537_v27 = vsub.f32 %v505_v10, %v535_v25  ;;  %v538_v28 = vsub.f32 %v510_v14, %v535_v25  ;;  %v539_v29 = vsub.f32 %v515_v16, %v535_v25  ;;  %v615_v8 = vld [vmem:[%s1338_s11 + $0x18] sm:$0xff]  ;;  %v633_v16 = vpop.permute.xlu0 %632  ;;  %s1038_s11 = smov [#allocation3]  }
 0x20a   :  { %s886_s19 = sshll.u32 %s1038_s11, 4  ;;  %s887_s19 = int_to_ptr.vmem [resolvable:$true] %s886_s19 }
 0x20b   :  { %v540_v30 = vmul.f32 %v536_v26, %v536_v26  ;;  %v541_v31 = vmul.f32 %v537_v27, %v537_v27  ;;  %v542_v32 = vmul.f32 %v538_v28, %v538_v28  ;;  %v543_v34 = vmul.f32 %v539_v29, %v539_v29  ;;  %s1015_s1 = scalar_lea.vmem %s887_s19, 16  ;;  %s1019_s20 = scalar_lea.vmem %s887_s19, 32 }
 0x20c   :  { %p1016_p0 = scmp.ne.s32.totalorder %s887_s19, %s1015_s1  ;;  %p1020_p1 = scmp.lt.s32.totalorder %s887_s19, %s887_s19 }
 0x20d   :  { %v544_v33 = vadd.f32 %v541_v31, %v540_v30  ;;  %p1021_p2 = scmp.lt.s32.totalorder %s1019_s20, %s1015_s1 }
 0x20f   :  { %v545_v35 = vadd.f32 %v544_v33, %v542_v32  ;;  %p1022_p3 = por %p1021_p2, %p1020_p1 }
 0x211   :  { %v546_v36 = vadd.f32 %v545_v35, %v543_v34  ;;  %p1023_p4 = pnand %p1022_p3, %p1016_p0 }
 0x213   :  { %v547_v37 = vrot.slane %v546_v36, 4 }
 0x215   :  { %v548_v38 = vadd.f32 %v547_v37, %v546_v36 }
 0x217   :  { %v549_v39 = vrot.slane %v548_v38, 2 }
 0x219   :  { %v550_v40 = vadd.f32 %v549_v39, %v548_v38 }
 0x21b   :  { %v551_v41 = vrot.slane %v550_v40, 1 }
 0x21d   :  { %v552_v42 = vadd.f32 %v551_v41, %v550_v40 }
 0x21f   :  { %v553_v43 = vmul.f32 0.03125, %v552_v42 }
 0x221   :  { %v554_v44 = vadd.f32 1e-05, %v553_v43 }
 0x223   :  { %995 = vrsqrt.f32 %v554_v44 }
 0x230   :  { %v996_v49 = vpop.eup %995 }
 0x231   :  { %v558_v50 = vmul.f32 %v996_v49, %v538_v28  ;;  %v559_v51 = vmul.f32 %v996_v49, %v539_v29  ;;  %v557_v52 = vmul.f32 %v996_v49, %v537_v27  ;;  %v556_v55 = vmul.f32 %v996_v49, %v536_v26 }
 0x233   :  { %v583_v54 = vmul.f32 %v578_v45, %v559_v51  ;;  %v582_v56 = vmul.f32 %v573_v46, %v558_v50  ;;  %v581_v58 = vmul.f32 %v568_v48, %v557_v52  ;;  %v580_v60 = vmul.f32 %v563_v57, %v556_v55  ;;  %v782_v50 = vpop.permute.xlu0 %781  ;;  %v787_v51 = vpop.permute.xlu1 %786 }
 0x235   :  { %v607_v59 = vadd.f32 %v602_v47, %v583_v54  ;;  %v606_v61 = vadd.f32 %v597_v53, %v582_v56  ;;  %v605_v63 = vadd.f32 %v592_v62, %v581_v58  ;;  %v604_v1 = vadd.f32 %v587_v0, %v580_v60 }
 0x237   :  { %997 = vtanh.f32 %v607_v59  ;;  %v792_v52 = vpop.permute.xlu0 %791  ;;  %v806_v53 = vpop.permute.xlu1 %805 }
 0x238   :  { %999 = vtanh.f32 %v606_v61 }
 0x239   :  { %1001 = vtanh.f32 %v605_v63 }
 0x23a   :  { %1003 = vtanh.f32 %v604_v1 }
 0x23b   :  { %v811_v54 = vpop.permute.xlu0 %810  ;;  %v797_v55 = vpop.permute.xlu1 %796 }
 0x23f   :  { %v816_v1 = vpop.permute.xlu0 %815 }
 0x244   :  { %v998_v2 = vpop.eup %997 }
 0x245   :  { %967 = vmatprep.subr.mxu1 %v998_v2  ;;  %v1000_v3 = vpop.eup %999 }
 0x246   :  { %968 = vmatpush3.msra.mxu1 %v998_v2  ;;  %v1002_v4 = vpop.eup %1001  ;;  %v821_v2 = vpop.permute.xlu1 %820 }
 0x247   :  { %969 = vmatprep.subr.mxu1 %v1000_v3  ;;  %v1004_v5 = vpop.eup %1003 }
 0x248   :  { %970 = vmatpush3.msra.mxu1 %v1000_v3 }
 0x249   :  { %971 = vmatprep.subr.mxu1 %v1002_v4 }
 0x24a   :  { %972 = vmatpush3.msra.mxu1 %v1002_v4 }
 0x24b   :  { %973 = vmatprep.subr.mxu1 %v1004_v5 }
 0x24c   :  { %974 = vmatpush3.msra.mxu1 %v1004_v5 }
 0x24d   :  { %976 = vmatmul.mubr.msk.f32.vlgmr.msra.gmra.mxu1 %vm420_vm3, %v613_v6 }
 0x24e   :  { %978 = vmatprep.mubr.msk.f32.mxu1 %vm420_vm3, %v614_v7  ;;  %v838_v7 = vpop.permute.xlu0 %837 }
 0x251   :  { %979 = vmatmul.mubr.msk.f32.gmra.mxu1 %vm420_vm3, %v615_v8  ;;  %v843_v8 = vpop.permute.xlu1 %842 }
 0x30d   :  { %v977_v10 = vpop.f32.mrf.mxu1 }
 0x30e   :  { %v724_v15 = vadd.f32 %v977_v10, %v628_v11 }
 0x30f   :  { %v718_v12 = vpop.f32.mrf.mxu1 }
 0x310   :  { %v719_v13 = vadd.f32 %v718_v12, %v623_v9 }
 0x311   :  { %v980_v14 = vpop.f32.mrf.mxu1 }
 0x312   :  { %v745_v18 = vadd.f32 %v724_v15, %v719_v13  ;;  %v734_v21 = vadd.f32 %v980_v14, %v638_v20 }
 0x313   :  { %v728_v17 = vpop.f32.mrf.mxu1 }
 0x314   :  { %v729_v19 = vadd.f32 %v728_v17, %v633_v16 }
 0x316   :  { %v746_v22 = vadd.f32 %v745_v18, %v729_v19  ;;  %v853_v18 = vpop.permute.xlu1 %852 }
 0x318   :  { %v747_v23 = vadd.f32 %v746_v22, %v734_v21 }
 0x31a   :  { %v748_v24 = vrot.slane %v747_v23, 4 }
 0x31c   :  { %v749_v25 = vadd.f32 %v748_v24, %v747_v23 }
 0x31e   :  { %v750_v26 = vrot.slane %v749_v25, 2 }
 0x320   :  { %v751_v27 = vadd.f32 %v750_v26, %v749_v25 }
 0x322   :  { %v752_v28 = vrot.slane %v751_v27, 1 }
 0x324   :  { %v753_v29 = vadd.f32 %v752_v28, %v751_v27 }
 0x326   :  { %v754_v30 = vmul.f32 0.03125, %v753_v29 }
 0x328   :  { %v755_v31 = vsub.f32 %v719_v13, %v754_v30  ;;  %v756_v32 = vsub.f32 %v724_v15, %v754_v30  ;;  %v757_v33 = vsub.f32 %v729_v19, %v754_v30  ;;  %v758_v34 = vsub.f32 %v734_v21, %v754_v30  ;;  %v848_v15 = vpop.permute.xlu0 %847 }
 0x329   :  { %v874_v21 = vlaneseq }
 0x32a   :  { %v759_v35 = vmul.f32 %v755_v31, %v755_v31  ;;  %v760_v36 = vmul.f32 %v756_v32, %v756_v32  ;;  %v761_v37 = vmul.f32 %v757_v33, %v757_v33  ;;  %v762_v39 = vmul.f32 %v758_v34, %v758_v34 }
 0x32b   :  { %v875_v24 = vshrl.u32 %v874_v21, 7 }
 0x32c   :  { %v763_v38 = vadd.f32 %v760_v36, %v759_v35  ;;  %v872_v29 = vpop.permute.xlu0 %871 }
 0x32d   :  { %v876_v27 = vsub.s32 0, %v875_v24 }
 0x32e   :  { %v764_v40 = vadd.f32 %v763_v38, %v761_v37 }
 0x330   :  { %v765_v41 = vadd.f32 %v764_v40, %v762_v39 }
 0x332   :  { %v766_v42 = vrot.slane %v765_v41, 4 }
 0x334   :  { %v767_v43 = vadd.f32 %v766_v42, %v765_v41 }
 0x336   :  { %v768_v44 = vrot.slane %v767_v43, 2 }
 0x338   :  { %v769_v45 = vadd.f32 %v768_v44, %v767_v43 }
 0x33a   :  { %v770_v46 = vrot.slane %v769_v45, 1 }
 0x33c   :  { %v771_v47 = vadd.f32 %v770_v46, %v769_v45 }
 0x33e   :  { %v772_v48 = vmul.f32 0.03125, %v771_v47 }
 0x340   :  { %v773_v49 = vadd.f32 1e-05, %v772_v48 }
 0x342   :  { %1005 = vrsqrt.f32 %v773_v49 }
 0x34f   :  { %v1006_v56 = vpop.eup %1005 }
 0x350   :  { %v775_v57 = vmul.f32 %v1006_v56, %v755_v31  ;;  %v776_v58 = vmul.f32 %v1006_v56, %v756_v32  ;;  %v777_v59 = vmul.f32 %v1006_v56, %v757_v33  ;;  %v778_v60 = vmul.f32 %v1006_v56, %v758_v34 }
 0x351   :  { %v877_v31 = vrot.slane %v872_v29, %v876_v27 }
 0x352   :  { %v799_v61 = vmul.f32 %v782_v50, %v775_v57  ;;  %v800_v62 = vmul.f32 %v787_v51, %v776_v58  ;;  %v801_v63 = vmul.f32 %v792_v52, %v777_v59  ;;  %v802_v0 = vmul.f32 %v797_v55, %v778_v60 }
 0x354   :  { %v823_v3 = vadd.f32 %v806_v53, %v799_v61  ;;  %v824_v4 = vadd.f32 %v811_v54, %v800_v62  ;;  %v825_v5 = vadd.f32 %v816_v1, %v801_v63  ;;  %v826_v6 = vadd.f32 %v821_v2, %v802_v0 }
 0x356   :  { %1007 = vtanh.f32 %v823_v3 }
 0x357   :  { %1009 = vtanh.f32 %v824_v4 }
 0x358   :  { %1011 = vtanh.f32 %v825_v5 }
 0x359   :  { %1013 = vtanh.f32 %v826_v6 }
 0x363   :  { %v1008_v9 = vpop.eup %1007 }
 0x364   :  { %v1010_v10 = vpop.eup %1009  ;;  %v855_v11 = vmul.f32 %v1008_v9, %v838_v7 }
 0x365   :  { %v1012_v12 = vpop.eup %1011  ;;  %v856_v13 = vmul.f32 %v1010_v10, %v843_v8 }
 0x366   :  { %v1014_v14 = vpop.eup %1013  ;;  %v857_v16 = vmul.f32 %v1012_v12, %v848_v15 }
 0x367   :  { %v859_v17 = vadd.f32 %v856_v13, %v855_v11  ;;  %v858_v19 = vmul.f32 %v1014_v14, %v853_v18 }
 0x369   :  { %v860_v20 = vadd.f32 %v859_v17, %v857_v16 }
 0x36b   :  { %v861_v22 = vadd.f32 %v860_v20, %v858_v19 }
 0x36d   :  { %v862_v23 = vrot.slane %v861_v22, 4 }
 0x36f   :  { %v863_v25 = vadd.f32 %v862_v23, %v861_v22 }
 0x371   :  { %v864_v26 = vrot.slane %v863_v25, 2 }
 0x373   :  { %v865_v28 = vadd.f32 %v864_v26, %v863_v25 }
 0x375   :  { %v866_v30 = vrot.slane %v865_v28, 1 }
 0x377   :  { %v867_v32 = vadd.f32 %v866_v30, %v865_v28 }
 0x379   :  { %v878_v33 = vadd.f32 %v877_v31, %v867_v32 }
 0x37b   :  { %879 = vst [vmem:[#allocation3] sm:$0x1] %v878_v33 }
 0x37c   :  { %1026 = shalt.err (!%p1023_p4)
}
 0x37d   :  { %889 = dma.vmem_to_hbm [thread:$0]  %s887_s19, 16, %s1344_s17, [#allocation4]  }
 0x37e   :  { %1035 = dma.done.wait [#allocation4], 16  }
 0x37f   :  { %1036 = vsyncadd [#allocation4], 4294967280 }
 0x380   :  { %893 = vsyncpa [#allocation4], 1 }

</bundles_post_ra>
